<compile_context>
chip_gen: v5e
topology: v5e:2x2
jax: 0.10.0
libtpu: 0.0.40
codegen_flags: <defaults>
</compile_context>

<pallas_src>
import functools

import numpy as np
import jax
import jax.numpy as jnp
from jax.experimental import pallas as pl
from jax.experimental.pallas import tpu as pltpu

IMG_H = IMG_W = 16
N_CLASSES = 10
CONV_CH = 128
LRELU_SLOPE = 0.2
K1 = 4 * 3 * 3          # conv1 patch length (Cin * kh * kw) = 36
K1_PAD = 128            # lane-aligned K for the conv1 matmul
OH1 = OW1 = 7           # conv1 output spatial (16 -> 7, k=3 s=2 p=0)
OH2 = OW2 = 4           # conv2 output spatial (7 -> 4,  k=3 s=2 p=1)


# ------------------------------ Pallas kernel -------------------------------

def _fused_gan_loss_kernel(p1_ref, w1_ref, b1_ref, msk_ref, w2_ref, b2_ref,
                           wfc_ref, bl_ref, t_ref, o_ref):
    """conv1 -> conv2 -> FC -> sigmoid/BCE mean, fully fused.

    p1_ref / msk_ref rows are ordered (tap j, batch b, oh2, ow2) with j
    outermost: 9 contiguous blocks of n_pos = B*4*4 rows.  Row (j, b, oh2, ow2)
    holds the conv1 input patch that produces h1[b, :, 2*oh2-1+di, 2*ow2-1+dj]
    (zero row + mask 0 when that position falls in conv2's zero padding).
    """
    n_rows = p1_ref.shape[0]            # 9 * B * OH2 * OW2
    n_pos = n_rows // 9                 # B * OH2 * OW2
    n_b = t_ref.shape[0]                # batch size

    # conv1 for ALL taps at once: one (9*n_pos, 128) x (128, 128) bf16 MXU
    # matmul with f32 accumulate; bias + LeakyReLU + padding mask on the VPU.
    h = jnp.dot(p1_ref[...], w1_ref[...], preferred_element_type=jnp.float32)
    h = h + b1_ref[...]
    h = jnp.where(h > 0, h, LRELU_SLOPE * h)          # LeakyReLU(0.2), f32
    h = h * msk_ref[...]                              # zero conv2-padding rows
    h_bf = h.astype(jnp.bfloat16)                     # MXU operand for conv2

    # conv2 tap j: accumulate h_j @ W2[:, :, di, dj] (bf16 MXU, f32 acc).
    # Row slices are static and sublane-aligned (n_pos is a multiple of 16).
    acc = jnp.zeros((n_pos, CONV_CH), jnp.float32)
    for j in range(9):                  # static unroll over the 3x3 conv2 taps
        acc = acc + jnp.dot(h_bf[j * n_pos:(j + 1) * n_pos, :], w2_ref[j],
                            preferred_element_type=jnp.float32)

    y2 = acc + b2_ref[...]
    y2 = jnp.where(y2 > 0, y2, LRELU_SLOPE * y2)      # (n_pos, 128)

    # Linear(2048 -> 1): out_features == 1, so use a VPU multiply + reductions
    # instead of a lane-sparse MXU pass (wfc[h*4+w, c] == wl[0, c*16+h*4+w]).
    y2 = y2.reshape(n_b, n_pos // n_b, CONV_CH)       # (B, 16, 128)
    prod = y2 * wfc_ref[...][None, :, :]
    logits = jnp.sum(jnp.sum(prod, axis=2), axis=1, keepdims=True)   # (B, 1)
    z = logits + bl_ref[...]

    # BCE on sigmoid(z), computed stably from logits:
    #   log(sigmoid(z)) = -softplus(-z), log(1-sigmoid(z)) = -softplus(z);
    # clamp log terms at -100 like torch.nn.functional.binary_cross_entropy.
    t = t_ref[...]
    sp_pos = jnp.maximum(z, 0.0) + jnp.log(1.0 + jnp.exp(-jnp.abs(z)))  # softplus(z)
    sp_neg = sp_pos - z                                                  # softplus(-z)
    log_p = jnp.maximum(-sp_neg, -100.0)
    log_1mp = jnp.maximum(-sp_pos, -100.0)
    loss = -(t * log_p + (1.0 - t) * log_1mp)          # (B, 1)
    o_ref[0, 0] = jnp.sum(loss) * (1.0 / n_b)          # scalar mean -> SMEM


def fused_gan_loss(p1_sel, msk, params, target):
    loss = pl.pallas_call(
        _fused_gan_loss_kernel,
        out_shape=jax.ShapeDtypeStruct((1, 1), jnp.float32),
        in_specs=[pl.BlockSpec(memory_space=pltpu.MemorySpace.VMEM)] * 9,
        out_specs=pl.BlockSpec(memory_space=pltpu.MemorySpace.SMEM),
    )(p1_sel, params["w1m"], params["b1"], msk, params["w2m"], params["b2"],
      params["wfc"], params["bl"], target)
    return loss[0, 0]


# -------------------------------- JAX glue ----------------------------------

def im2col_conv1(x):
    """3x3 / stride-2 / no-pad patches of NCHW x -> (B*7*7, 36), (C,kh,kw) order."""
    B, C, _, _ = x.shape
    cols = []
    for i in range(3):
        for j in range(3):
            cols.append(x[:, :, i:i + 2 * OH1:2, j:j + 2 * OW1:2])
    patches = jnp.stack(cols, axis=2)              # (B, C, 9, 7, 7)
    patches = patches.transpose(0, 3, 4, 1, 2)     # (B, 7, 7, C, 9)
    return patches.reshape(B * OH1 * OW1, C * 9)


@functools.lru_cache(maxsize=None)
def conv2_gather_plan(n_batch):
    """Static row gather + padding mask reordering conv1 patches into
    conv2-tap order (tap j, batch, oh2, ow2).  Pure numpy, cached per batch."""
    n_pos = n_batch * OH2 * OW2
    idx = np.zeros((9, n_pos), np.int32)
    msk = np.zeros((9, n_pos, 1), np.float32)
    for di in range(3):
        for dj in range(3):
            j = di * 3 + dj
            for b in range(n_batch):
                for oh in range(OH2):
                    for ow in range(OW2):
                        m = (b * OH2 + oh) * OW2 + ow
                        r1 = 2 * oh - 1 + di
                        c1 = 2 * ow - 1 + dj
                        if 0 <= r1 < OH1 and 0 <= c1 < OW1:
                            idx[j, m] = (b * OH1 + r1) * OW1 + c1
                            msk[j, m, 0] = 1.0
    return idx.reshape(-1), msk.reshape(-1, 1)


def prepare_params(embed_table, w1, b1, w2, b2, wl, bl):
    """One-time (outside jit) repack of PyTorch-layout params into
    matmul-ready, lane-aligned layouts; MXU operands pre-cast to bf16."""
    w1m = w1.reshape(CONV_CH, K1).T                              # (36, 128)
    w1m = jnp.pad(w1m, ((0, K1_PAD - K1), (0, 0))).astype(jnp.bfloat16)
    w2m = w2.transpose(2, 3, 1, 0).reshape(9, CONV_CH, CONV_CH).astype(jnp.bfloat16)
    wfc = wl.reshape(CONV_CH, OH2, OW2).transpose(1, 2, 0).reshape(OH2 * OW2, CONV_CH)
    return {
        "embed": embed_table,
        "w1m": w1m,
        "b1": b1.reshape(1, CONV_CH),
        "w2m": w2m,
        "b2": b2.reshape(1, CONV_CH),
        "wfc": wfc,
        "bl": bl.reshape(1, 1),
    }


def gan_loss_forward(params, g_output, g_txt_label, real_txt_label):
    """GANLoss.forward: BCE(discriminator(g_output, g_txt_label), real_txt_label)."""
    B = g_output.shape[0]

    # Embedding lookup -> (B, 1, H, W), concat with image on channel axis.
    emb = params["embed"][g_txt_label].reshape(B, 1, IMG_H, IMG_W)
    x = jnp.concatenate([g_output, emb], axis=1)           # (B, 4, 16, 16)

    # conv1 im2col (API-boundary data movement) reordered into conv2-tap order,
    # zero-padded on K for clean lane alignment, cast to bf16 for the MXU.
    p1 = im2col_conv1(x)                                   # (B*49, 36)
    idx, msk = conv2_gather_plan(B)                        # static numpy constants
    p1_sel = p1[idx].astype(jnp.bfloat16)                  # (9*B*16, 36)
    p1_sel = jnp.pad(p1_sel, ((0, 0), (0, K1_PAD - K1)))   # (9*B*16, 128)

    # TODO(synk): Dropout(0.4) treated as identity (eval mode); no clean
    # deterministic Pallas equivalent of torch's training-mode dropout RNG.
    return fused_gan_loss(p1_sel, jnp.asarray(msk), params, real_txt_label)


# ---------------------------------- main -------------------------------------

if __name__ == "__main__":
    key = jax.random.PRNGKey(0)
    keys = jax.random.split(key, 8)

    B = 2

    # Deterministic parameter init (shapes from Discriminator.__init__).
    embed_table = 0.02 * jax.random.normal(keys[0], (N_CLASSES, IMG_H * IMG_W), jnp.float32)
    w1 = 0.05 * jax.random.normal(keys[1], (CONV_CH, 4, 3, 3), jnp.float32)
    b1 = jnp.zeros((CONV_CH,), jnp.float32)
    w2 = 0.05 * jax.random.normal(keys[2], (CONV_CH, CONV_CH, 3, 3), jnp.float32)
    b2 = jnp.zeros((CONV_CH,), jnp.float32)
    wl = 0.02 * jax.random.normal(keys[3], (1, 4 * 4 * CONV_CH), jnp.float32)
    bl = jnp.zeros((1,), jnp.float32)

    params = prepare_params(embed_table, w1, b1, w2, b2, wl, bl)

    # Deterministic example inputs.
    g_output = jax.random.normal(keys[4], (B, 3, IMG_H, IMG_W), jnp.float32)    # fake images
    g_txt_label = jax.random.randint(keys[5], (B,), 0, N_CLASSES)               # class labels
    real_txt_label = jax.random.uniform(keys[6], (B, 1), jnp.float32)           # BCE targets

    loss_fn = jax.jit(gan_loss_forward)
    loss = loss_fn(params, g_output, g_txt_label, real_txt_label)
    jax.block_until_ready(loss)
    assert loss.shape == () and jnp.isfinite(loss)
    print("KERNEL_OK")
</pallas_src>

<mosaic_0001>
module attributes {stable_mosaic.version = 11 : i64} {
  func.func @_fused_gan_loss_kernel(%arg0: memref<288x128xbf16, #tpu.memory_space<vmem>>, %arg1: memref<128x128xbf16, #tpu.memory_space<vmem>>, %arg2: memref<1x128xf32, #tpu.memory_space<vmem>>, %arg3: memref<288x1xf32, #tpu.memory_space<vmem>>, %arg4: memref<9x128x128xbf16, #tpu.memory_space<vmem>>, %arg5: memref<1x128xf32, #tpu.memory_space<vmem>>, %arg6: memref<16x128xf32, #tpu.memory_space<vmem>>, %arg7: memref<1x1xf32, #tpu.memory_space<vmem>>, %arg8: memref<2x1xf32, #tpu.memory_space<vmem>>, %arg9: memref<1x1xf32, #tpu.memory_space<smem>>) attributes {dimension_semantics = [], scalar_prefetch = 0 : i64, scratch_operands = 0 : i64, tpu.core_type = #tpu.core_type<tc>} {
    %c0 = arith.constant 0 : index
    %c0_0 = arith.constant 0 : index
    %0 = vector.load %arg0[%c0, %c0_0] : memref<288x128xbf16, #tpu.memory_space<vmem>>, vector<288x128xbf16>
    %c0_1 = arith.constant 0 : index
    %c0_2 = arith.constant 0 : index
    %1 = vector.load %arg1[%c0_1, %c0_2] : memref<128x128xbf16, #tpu.memory_space<vmem>>, vector<128x128xbf16>
    %cst = arith.constant dense<0.000000e+00> : vector<288x128xf32>
    %2 = tpu.matmul %0, %1, %cst {dimension_numbers = #tpu.dot_dimension_numbers<[1], [0], [0], [1], [0, 0, 1, 1], [], []>} : vector<288x128xbf16>, vector<128x128xbf16>, vector<288x128xf32> -> vector<288x128xf32>
    %c0_3 = arith.constant 0 : index
    %c0_4 = arith.constant 0 : index
    %3 = vector.load %arg2[%c0_3, %c0_4] : memref<1x128xf32, #tpu.memory_space<vmem>>, vector<1x128xf32>
    %4 = vector.broadcast %3 : vector<1x128xf32> to vector<288x128xf32>
    %5 = arith.addf %2, %4 : vector<288x128xf32>
    %cst_5 = arith.constant 0.000000e+00 : f32
    %6 = vector.broadcast %cst_5 : f32 to vector<288x128xf32>
    %7 = arith.cmpf ogt, %5, %6 : vector<288x128xf32>
    %cst_6 = arith.constant 2.000000e-01 : f32
    %8 = vector.broadcast %cst_6 : f32 to vector<288x128xf32>
    %9 = arith.mulf %8, %5 : vector<288x128xf32>
    %10 = arith.select %7, %5, %9 : vector<288x128xi1>, vector<288x128xf32>
    %c0_7 = arith.constant 0 : index
    %c0_8 = arith.constant 0 : index
    %11 = vector.load %arg3[%c0_7, %c0_8] : memref<288x1xf32, #tpu.memory_space<vmem>>, vector<288x1xf32>
    %12 = vector.broadcast %11 : vector<288x1xf32> to vector<288x128xf32>
    %13 = arith.mulf %10, %12 : vector<288x128xf32>
    %14 = arith.truncf %13 : vector<288x128xf32> to vector<288x128xbf16>
    %cst_9 = arith.constant 0.000000e+00 : f32
    %15 = vector.broadcast %cst_9 : f32 to vector<32x128xf32>
    %16 = vector.extract_strided_slice %14 {offsets = [0, 0], sizes = [32, 128], strides = [1, 1]} : vector<288x128xbf16> to vector<32x128xbf16>
    %c0_10 = arith.constant 0 : index
    %c0_11 = arith.constant 0 : index
    %c0_12 = arith.constant 0 : index
    %17 = vector.load %arg4[%c0_10, %c0_11, %c0_12] : memref<9x128x128xbf16, #tpu.memory_space<vmem>>, vector<1x128x128xbf16>
    %18 = vector.shape_cast %17 : vector<1x128x128xbf16> to vector<128x128xbf16>
    %cst_13 = arith.constant dense<0.000000e+00> : vector<32x128xf32>
    %19 = tpu.matmul %16, %18, %cst_13 {dimension_numbers = #tpu.dot_dimension_numbers<[1], [0], [0], [1], [0, 0, 1, 1], [], []>} : vector<32x128xbf16>, vector<128x128xbf16>, vector<32x128xf32> -> vector<32x128xf32>
    %20 = arith.addf %15, %19 : vector<32x128xf32>
    %21 = vector.extract_strided_slice %14 {offsets = [32, 0], sizes = [32, 128], strides = [1, 1]} : vector<288x128xbf16> to vector<32x128xbf16>
    %c1 = arith.constant 1 : index
    %c0_14 = arith.constant 0 : index
    %c0_15 = arith.constant 0 : index
    %22 = vector.load %arg4[%c1, %c0_14, %c0_15] : memref<9x128x128xbf16, #tpu.memory_space<vmem>>, vector<1x128x128xbf16>
    %23 = vector.shape_cast %22 : vector<1x128x128xbf16> to vector<128x128xbf16>
    %cst_16 = arith.constant dense<0.000000e+00> : vector<32x128xf32>
    %24 = tpu.matmul %21, %23, %cst_16 {dimension_numbers = #tpu.dot_dimension_numbers<[1], [0], [0], [1], [0, 0, 1, 1], [], []>} : vector<32x128xbf16>, vector<128x128xbf16>, vector<32x128xf32> -> vector<32x128xf32>
    %25 = arith.addf %20, %24 : vector<32x128xf32>
    %26 = vector.extract_strided_slice %14 {offsets = [64, 0], sizes = [32, 128], strides = [1, 1]} : vector<288x128xbf16> to vector<32x128xbf16>
    %c2 = arith.constant 2 : index
    %c0_17 = arith.constant 0 : index
    %c0_18 = arith.constant 0 : index
    %27 = vector.load %arg4[%c2, %c0_17, %c0_18] : memref<9x128x128xbf16, #tpu.memory_space<vmem>>, vector<1x128x128xbf16>
    %28 = vector.shape_cast %27 : vector<1x128x128xbf16> to vector<128x128xbf16>
    %cst_19 = arith.constant dense<0.000000e+00> : vector<32x128xf32>
    %29 = tpu.matmul %26, %28, %cst_19 {dimension_numbers = #tpu.dot_dimension_numbers<[1], [0], [0], [1], [0, 0, 1, 1], [], []>} : vector<32x128xbf16>, vector<128x128xbf16>, vector<32x128xf32> -> vector<32x128xf32>
    %30 = arith.addf %25, %29 : vector<32x128xf32>
    %31 = vector.extract_strided_slice %14 {offsets = [96, 0], sizes = [32, 128], strides = [1, 1]} : vector<288x128xbf16> to vector<32x128xbf16>
    %c3 = arith.constant 3 : index
    %c0_20 = arith.constant 0 : index
    %c0_21 = arith.constant 0 : index
    %32 = vector.load %arg4[%c3, %c0_20, %c0_21] : memref<9x128x128xbf16, #tpu.memory_space<vmem>>, vector<1x128x128xbf16>
    %33 = vector.shape_cast %32 : vector<1x128x128xbf16> to vector<128x128xbf16>
    %cst_22 = arith.constant dense<0.000000e+00> : vector<32x128xf32>
    %34 = tpu.matmul %31, %33, %cst_22 {dimension_numbers = #tpu.dot_dimension_numbers<[1], [0], [0], [1], [0, 0, 1, 1], [], []>} : vector<32x128xbf16>, vector<128x128xbf16>, vector<32x128xf32> -> vector<32x128xf32>
    %35 = arith.addf %30, %34 : vector<32x128xf32>
    %36 = vector.extract_strided_slice %14 {offsets = [128, 0], sizes = [32, 128], strides = [1, 1]} : vector<288x128xbf16> to vector<32x128xbf16>
    %c4 = arith.constant 4 : index
    %c0_23 = arith.constant 0 : index
    %c0_24 = arith.constant 0 : index
    %37 = vector.load %arg4[%c4, %c0_23, %c0_24] : memref<9x128x128xbf16, #tpu.memory_space<vmem>>, vector<1x128x128xbf16>
    %38 = vector.shape_cast %37 : vector<1x128x128xbf16> to vector<128x128xbf16>
    %cst_25 = arith.constant dense<0.000000e+00> : vector<32x128xf32>
    %39 = tpu.matmul %36, %38, %cst_25 {dimension_numbers = #tpu.dot_dimension_numbers<[1], [0], [0], [1], [0, 0, 1, 1], [], []>} : vector<32x128xbf16>, vector<128x128xbf16>, vector<32x128xf32> -> vector<32x128xf32>
    %40 = arith.addf %35, %39 : vector<32x128xf32>
    %41 = vector.extract_strided_slice %14 {offsets = [160, 0], sizes = [32, 128], strides = [1, 1]} : vector<288x128xbf16> to vector<32x128xbf16>
    %c5 = arith.constant 5 : index
    %c0_26 = arith.constant 0 : index
    %c0_27 = arith.constant 0 : index
    %42 = vector.load %arg4[%c5, %c0_26, %c0_27] : memref<9x128x128xbf16, #tpu.memory_space<vmem>>, vector<1x128x128xbf16>
    %43 = vector.shape_cast %42 : vector<1x128x128xbf16> to vector<128x128xbf16>
    %cst_28 = arith.constant dense<0.000000e+00> : vector<32x128xf32>
    %44 = tpu.matmul %41, %43, %cst_28 {dimension_numbers = #tpu.dot_dimension_numbers<[1], [0], [0], [1], [0, 0, 1, 1], [], []>} : vector<32x128xbf16>, vector<128x128xbf16>, vector<32x128xf32> -> vector<32x128xf32>
    %45 = arith.addf %40, %44 : vector<32x128xf32>
    %46 = vector.extract_strided_slice %14 {offsets = [192, 0], sizes = [32, 128], strides = [1, 1]} : vector<288x128xbf16> to vector<32x128xbf16>
    %c6 = arith.constant 6 : index
    %c0_29 = arith.constant 0 : index
    %c0_30 = arith.constant 0 : index
    %47 = vector.load %arg4[%c6, %c0_29, %c0_30] : memref<9x128x128xbf16, #tpu.memory_space<vmem>>, vector<1x128x128xbf16>
    %48 = vector.shape_cast %47 : vector<1x128x128xbf16> to vector<128x128xbf16>
    %cst_31 = arith.constant dense<0.000000e+00> : vector<32x128xf32>
    %49 = tpu.matmul %46, %48, %cst_31 {dimension_numbers = #tpu.dot_dimension_numbers<[1], [0], [0], [1], [0, 0, 1, 1], [], []>} : vector<32x128xbf16>, vector<128x128xbf16>, vector<32x128xf32> -> vector<32x128xf32>
    %50 = arith.addf %45, %49 : vector<32x128xf32>
    %51 = vector.extract_strided_slice %14 {offsets = [224, 0], sizes = [32, 128], strides = [1, 1]} : vector<288x128xbf16> to vector<32x128xbf16>
    %c7 = arith.constant 7 : index
    %c0_32 = arith.constant 0 : index
    %c0_33 = arith.constant 0 : index
    %52 = vector.load %arg4[%c7, %c0_32, %c0_33] : memref<9x128x128xbf16, #tpu.memory_space<vmem>>, vector<1x128x128xbf16>
    %53 = vector.shape_cast %52 : vector<1x128x128xbf16> to vector<128x128xbf16>
    %cst_34 = arith.constant dense<0.000000e+00> : vector<32x128xf32>
    %54 = tpu.matmul %51, %53, %cst_34 {dimension_numbers = #tpu.dot_dimension_numbers<[1], [0], [0], [1], [0, 0, 1, 1], [], []>} : vector<32x128xbf16>, vector<128x128xbf16>, vector<32x128xf32> -> vector<32x128xf32>
    %55 = arith.addf %50, %54 : vector<32x128xf32>
    %56 = vector.extract_strided_slice %14 {offsets = [256, 0], sizes = [32, 128], strides = [1, 1]} : vector<288x128xbf16> to vector<32x128xbf16>
    %c8 = arith.constant 8 : index
    %c0_35 = arith.constant 0 : index
    %c0_36 = arith.constant 0 : index
    %57 = vector.load %arg4[%c8, %c0_35, %c0_36] : memref<9x128x128xbf16, #tpu.memory_space<vmem>>, vector<1x128x128xbf16>
    %58 = vector.shape_cast %57 : vector<1x128x128xbf16> to vector<128x128xbf16>
    %cst_37 = arith.constant dense<0.000000e+00> : vector<32x128xf32>
    %59 = tpu.matmul %56, %58, %cst_37 {dimension_numbers = #tpu.dot_dimension_numbers<[1], [0], [0], [1], [0, 0, 1, 1], [], []>} : vector<32x128xbf16>, vector<128x128xbf16>, vector<32x128xf32> -> vector<32x128xf32>
    %60 = arith.addf %55, %59 : vector<32x128xf32>
    %c0_38 = arith.constant 0 : index
    %c0_39 = arith.constant 0 : index
    %61 = vector.load %arg5[%c0_38, %c0_39] : memref<1x128xf32, #tpu.memory_space<vmem>>, vector<1x128xf32>
    %62 = vector.broadcast %61 : vector<1x128xf32> to vector<32x128xf32>
    %63 = arith.addf %60, %62 : vector<32x128xf32>
    %cst_40 = arith.constant 0.000000e+00 : f32
    %64 = vector.broadcast %cst_40 : f32 to vector<32x128xf32>
    %65 = arith.cmpf ogt, %63, %64 : vector<32x128xf32>
    %cst_41 = arith.constant 2.000000e-01 : f32
    %66 = vector.broadcast %cst_41 : f32 to vector<32x128xf32>
    %67 = arith.mulf %66, %63 : vector<32x128xf32>
    %68 = arith.select %65, %63, %67 : vector<32x128xi1>, vector<32x128xf32>
    %69 = vector.shape_cast %68 : vector<32x128xf32> to vector<2x16x128xf32>
    %c0_42 = arith.constant 0 : index
    %c0_43 = arith.constant 0 : index
    %70 = vector.load %arg6[%c0_42, %c0_43] : memref<16x128xf32, #tpu.memory_space<vmem>>, vector<16x128xf32>
    %71 = vector.shape_cast %70 : vector<16x128xf32> to vector<1x16x128xf32>
    %72 = vector.broadcast %71 : vector<1x16x128xf32> to vector<2x16x128xf32>
    %73 = arith.mulf %69, %72 : vector<2x16x128xf32>
    %cst_44 = arith.constant dense<0.000000e+00> : vector<2x16xf32>
    %74 = vector.multi_reduction <add>, %73, %cst_44 [2] : vector<2x16x128xf32> to vector<2x16xf32>
    %cst_45 = arith.constant dense<0.000000e+00> : vector<2xf32>
    %75 = vector.multi_reduction <add>, %74, %cst_45 [1] : vector<2x16xf32> to vector<2xf32>
    %76 = vector.shape_cast %75 : vector<2xf32> to vector<2x1xf32>
    %c0_46 = arith.constant 0 : index
    %c0_47 = arith.constant 0 : index
    %77 = vector.load %arg7[%c0_46, %c0_47] : memref<1x1xf32, #tpu.memory_space<vmem>>, vector<1x1xf32>
    %78 = vector.broadcast %77 : vector<1x1xf32> to vector<2x1xf32>
    %79 = arith.addf %76, %78 : vector<2x1xf32>
    %c0_48 = arith.constant 0 : index
    %c0_49 = arith.constant 0 : index
    %80 = vector.load %arg8[%c0_48, %c0_49] : memref<2x1xf32, #tpu.memory_space<vmem>>, vector<2x1xf32>
    %cst_50 = arith.constant 0.000000e+00 : f32
    %81 = vector.broadcast %cst_50 : f32 to vector<2x1xf32>
    %82 = arith.maximumf %79, %81 : vector<2x1xf32>
    %83 = math.absf %79 : vector<2x1xf32>
    %cst_51 = arith.constant 0.000000e+00 : f32
    %84 = vector.broadcast %cst_51 : f32 to vector<2x1xf32>
    %85 = arith.subf %84, %83 : vector<2x1xf32>
    %86 = math.exp %85 : vector<2x1xf32>
    %cst_52 = arith.constant 1.000000e+00 : f32
    %87 = vector.broadcast %cst_52 : f32 to vector<2x1xf32>
    %88 = arith.addf %87, %86 : vector<2x1xf32>
    %89 = math.log %88 : vector<2x1xf32>
    %90 = arith.addf %82, %89 : vector<2x1xf32>
    %91 = arith.subf %90, %79 : vector<2x1xf32>
    %cst_53 = arith.constant 0.000000e+00 : f32
    %92 = vector.broadcast %cst_53 : f32 to vector<2x1xf32>
    %93 = arith.subf %92, %91 : vector<2x1xf32>
    %cst_54 = arith.constant -1.000000e+02 : f32
    %94 = vector.broadcast %cst_54 : f32 to vector<2x1xf32>
    %95 = arith.maximumf %93, %94 : vector<2x1xf32>
    %cst_55 = arith.constant 0.000000e+00 : f32
    %96 = vector.broadcast %cst_55 : f32 to vector<2x1xf32>
    %97 = arith.subf %96, %90 : vector<2x1xf32>
    %cst_56 = arith.constant -1.000000e+02 : f32
    %98 = vector.broadcast %cst_56 : f32 to vector<2x1xf32>
    %99 = arith.maximumf %97, %98 : vector<2x1xf32>
    %100 = arith.mulf %80, %95 : vector<2x1xf32>
    %cst_57 = arith.constant 1.000000e+00 : f32
    %101 = vector.broadcast %cst_57 : f32 to vector<2x1xf32>
    %102 = arith.subf %101, %80 : vector<2x1xf32>
    %103 = arith.mulf %102, %99 : vector<2x1xf32>
    %104 = arith.addf %100, %103 : vector<2x1xf32>
    %cst_58 = arith.constant 0.000000e+00 : f32
    %105 = vector.broadcast %cst_58 : f32 to vector<2x1xf32>
    %106 = arith.subf %105, %104 : vector<2x1xf32>
    %107 = vector.shape_cast %106 : vector<2x1xf32> to vector<1x2x1xf32>
    %cst_59 = arith.constant dense<0.000000e+00> : vector<1xf32>
    %108 = vector.multi_reduction <add>, %107, %cst_59 [1, 2] : vector<1x2x1xf32> to vector<1xf32>
    %109 = vector.shape_cast %108 : vector<1xf32> to vector<1x1x1xf32>
    %110 = vector.extract %109[0, 0, 0] : f32 from vector<1x1x1xf32>
    %cst_60 = arith.constant 5.000000e-01 : f32
    %111 = arith.mulf %110, %cst_60 : f32
    %c0_61 = arith.constant 0 : index
    %c0_62 = arith.constant 0 : index
    %112 = memref.load %arg9[%c0_61, %c0_62] : memref<1x1xf32, #tpu.memory_space<smem>>
    memref.store %111, %arg9[%c0_61, %c0_62] : memref<1x1xf32, #tpu.memory_space<smem>>
    return
  }
}

</mosaic_0001>

<bundles_post_ra>
// kernel: gan_loss_forward.1
= control target key start
LH: loop header
LB: loop body
LE: loop exit
PB: predicated region body
PF: predicated region fallthrough
CT: control target
= control target key end

     0   :  { %s2996_s0 = inlined_call_operand.vmem [shape: bf16[288,128], index: 0, kind: input, shape index: {}]   ;;  %s2997_s1 = inlined_call_operand.vmem [shape: bf16[128,128], index: 1, kind: input, shape index: {}]   ;;  %s2998_s2 = inlined_call_operand.vmem [shape: f32[1,128], index: 2, kind: input, shape index: {}]   ;;  %s2999_s3 = inlined_call_operand.vmem [shape: f32[288,1], index: 3, kind: input, shape index: {}]   ;;  %s3000_s4 = inlined_call_operand.vmem [shape: bf16[9,128,128], index: 4, kind: input, shape index: {}]   ;;  %s3001_s5 = inlined_call_operand.vmem [shape: f32[1,128], index: 5, kind: input, shape index: {}]   ;;  %s3002_s6 = inlined_call_operand.vmem [shape: f32[16,128], index: 6, kind: input, shape index: {}]   ;;  %s3003_s7 = inlined_call_operand.<no memory space> [shape: f32[1,1], index: 7, kind: input, shape index: {}]   ;;  %s3004_s8 = inlined_call_operand.vmem [shape: f32[2,1], index: 8, kind: input, shape index: {}]   ;;  %s3005_s9 = inlined_call_operand.hbm [shape: f32[1,1], index: 9, kind: output, shape index: {}]  }
   0x1   :  { %v14_v0 = vstv %s3003_s7 }
   0x2   :  { %15 = vst [vmem:[#allocation2] sm:$0x1] %v14_v0 }
   0x3   :  { %v2287_v1 = vld [vmem:[%s2997_s1 + $0x38] sm:$0xff]  ;;  %v2286_v2 = vld [vmem:[%s2997_s1 + $0x30] sm:$0xff]  ;;  %v2412_v3 = vmov 0   ;;  %v454_v4 = vld [vmem:[%s2999_s3] sm:$0xff] }
   0x4   :  { %247 = vmatpush.bf16.msra.mxu0 %v2287_v1  ;;  %2388 = vset.pattern.permute.xlu0 %v2412_v3 }
   0x5   :  { %2361 = vmatpush.bf16.msra.mxu2 %v2287_v1  ;;  %2362 = vmatpush.bf16.msra.mxu3 %v2287_v1 }
   0x6   :  { %492 = vperm.xlu0 %2388, %v454_v4   ;;  %2389 = vset.pattern.permute.xlu1 %v2412_v3 }
   0x7   :  { %16 = vsyncpa [#allocation4], 0  ;;  %2360 = vmatpush.bf16.msra.mxu1 %v2287_v1  ;;  %2390 = vset.pattern.permute.xlu2 %v2412_v3  ;;  %v2285_v5 = vld [vmem:[%s2997_s1 + $0x28] sm:$0xff]  ;;  %v2284_v6 = vld [vmem:[%s2997_s1 + $0x20] sm:$0xff]  ;;  %s1732_s18 = sshll.u32 %s3005_s9, 4  ;;  %s2413_s20 = smov [#allocation3]   ;;  %s1733_s18 = int_to_ptr.hbm [resolvable:$true] %s1732_s18 }
   0x8   :  { %248 = vmatpush.bf16.msra.mxu0 %v2286_v2  ;;  %v2283_v7 = vld [vmem:[%s2997_s1 + $0x18] sm:$0xff]  ;;  %v462_v8 = vld [vmem:[%s2999_s3 + $0x40] sm:$0xff]  ;;  %v455_v9 = vld [vmem:[%s2999_s3 + $0x8] sm:$0xff] }
   0x9   :  { %2364 = vmatpush.bf16.msra.mxu2 %v2286_v2  ;;  %2365 = vmatpush.bf16.msra.mxu3 %v2286_v2  ;;  %v2282_v10 = vld [vmem:[%s2997_s1 + $0x10] sm:$0xff]  ;;  %v2281_v11 = vld [vmem:[%s2997_s1 + $0x8] sm:$0xff]  ;;  %v2280_v14 = vld [vmem:[%s2997_s1] sm:$0xff] }
   0xa   :  { %532 = vperm.xlu1 %2389, %v462_v8   ;;  %v463_v12 = vld [vmem:[%s2999_s3 + $0x48] sm:$0xff]  ;;  %v456_v13 = vld [vmem:[%s2999_s3 + $0x10] sm:$0xff]  ;;  %v2262_v15 = vld [vmem:[%s2996_s0] sm:$0xff] }
   0xb   :  { %2363 = vmatpush.bf16.msra.mxu1 %v2286_v2  ;;  %v457_v16 = vld [vmem:[%s2999_s3 + $0x18] sm:$0xff]  ;;  %v2263_v18 = vld [vmem:[%s2996_s0 + $0x8] sm:$0xff]  ;;  %v458_v19 = vld [vmem:[%s2999_s3 + $0x20] sm:$0xff] }
   0xc   :  { %249 = vmatpush.bf16.msra.mxu0 %v2285_v5  ;;  %v465_v17 = vld [vmem:[%s2999_s3 + $0x58] sm:$0xff]  ;;  %v460_v20 = vld [vmem:[%s2999_s3 + $0x30] sm:$0xff]  ;;  %v2274_v21 = vld [vmem:[%s2996_s0 + $0x60] sm:$0xff]  ;;  %512 = vperm.xlu2 %2390, %v458_v19  }
   0xd   :  { %2367 = vmatpush.bf16.msra.mxu2 %v2285_v5  ;;  %2368 = vmatpush.bf16.msra.mxu3 %v2285_v5  ;;  %v2277_v22 = vld [vmem:[%s2996_s0 + $0x78] sm:$0xff]  ;;  %v470_v23 = vld [vmem:[%s2999_s3 + $0x80] sm:$0xff]  ;;  %v2271_v24 = vld [vmem:[%s2996_s0 + $0x48] sm:$0xff] }
   0xe   :  { %497 = vperm.xlu0 %2388, %v455_v9   ;;  %v459_v25 = vld [vmem:[%s2999_s3 + $0x28] sm:$0xff]  ;;  %v2264_v28 = vld [vmem:[%s2996_s0 + $0x10] sm:$0xff]  ;;  %v466_v30 = vld [vmem:[%s2999_s3 + $0x60] sm:$0xff] }
   0xf   :  { %2366 = vmatpush.bf16.msra.mxu1 %v2285_v5  ;;  %v471_v26 = vld [vmem:[%s2999_s3 + $0x88] sm:$0xff]  ;;  %v464_v29 = vld [vmem:[%s2999_s3 + $0x50] sm:$0xff]  ;;  %v2278_v32 = vld [vmem:[%s2996_s0 + $0x80] sm:$0xff] }
  0x10   :  { %250 = vmatpush.bf16.msra.mxu0 %v2284_v6  ;;  %v475_v27 = vld [vmem:[%s2999_s3 + $0xa8] sm:$0xff]  ;;  %v472_v33 = vld [vmem:[%s2999_s3 + $0x90] sm:$0xff]  ;;  %v461_v35 = vld [vmem:[%s2999_s3 + $0x38] sm:$0xff] }
  0x11   :  { %2370 = vmatpush.bf16.msra.mxu2 %v2284_v6  ;;  %2371 = vmatpush.bf16.msra.mxu3 %v2284_v6  ;;  %v2275_v31 = vld [vmem:[%s2996_s0 + $0x68] sm:$0xff]  ;;  %v2272_v34 = vld [vmem:[%s2996_s0 + $0x50] sm:$0xff]  ;;  %v473_v36 = vld [vmem:[%s2999_s3 + $0x98] sm:$0xff] }
  0x12   :  { %537 = vperm.xlu1 %2389, %v463_v12   ;;  %v477_v37 = vld [vmem:[%s2999_s3 + $0xb8] sm:$0xff]  ;;  %v474_v39 = vld [vmem:[%s2999_s3 + $0xa0] sm:$0xff]  ;;  %v468_v40 = vld [vmem:[%s2999_s3 + $0x70] sm:$0xff] }
  0x13   :  { %2369 = vmatpush.bf16.msra.mxu1 %v2284_v6  ;;  %v2265_v38 = vld [vmem:[%s2996_s0 + $0x18] sm:$0xff]  ;;  %v2276_v41 = vld [vmem:[%s2996_s0 + $0x70] sm:$0xff]  ;;  %v2279_v42 = vld [vmem:[%s2996_s0 + $0x88] sm:$0xff] }
  0x14   :  { %251 = vmatpush.bf16.msra.mxu0 %v2283_v7  ;;  %517 = vperm.xlu2 %2390, %v459_v25   ;;  %v482_v43 = vld [vmem:[%s2999_s3 + $0xe0] sm:$0xff]  ;;  %v2273_v44 = vld [vmem:[%s2996_s0 + $0x58] sm:$0xff]  ;;  %v467_v45 = vld [vmem:[%s2999_s3 + $0x68] sm:$0xff] }
  0x15   :  { %2373 = vmatpush.bf16.msra.mxu2 %v2283_v7  ;;  %2374 = vmatpush.bf16.msra.mxu3 %v2283_v7  ;;  %v483_v46 = vld [vmem:[%s2999_s3 + $0xe8] sm:$0xff]  ;;  %v2266_v48 = vld [vmem:[%s2996_s0 + $0x20] sm:$0xff]  ;;  %v476_v49 = vld [vmem:[%s2999_s3 + $0xb0] sm:$0xff] }
  0x16   :  { %502 = vperm.xlu0 %2388, %v456_v13   ;;  %v487_v47 = vld [vmem:[%s2999_s3 + $0x108] sm:$0xff]  ;;  %v478_v50 = vld [vmem:[%s2999_s3 + $0xc0] sm:$0xff]  ;;  %v484_v51 = vld [vmem:[%s2999_s3 + $0xf0] sm:$0xff] }
  0x17   :  { %2372 = vmatpush.bf16.msra.mxu1 %v2283_v7  ;;  %v469_v52 = vld [vmem:[%s2999_s3 + $0x78] sm:$0xff]  ;;  %v2267_v55 = vld [vmem:[%s2996_s0 + $0x28] sm:$0xff]  ;;  %v486_v56 = vld [vmem:[%s2999_s3 + $0x100] sm:$0xff] }
  0x18   :  { %252 = vmatpush.bf16.msra.mxu0 %v2282_v10  ;;  %v485_v53 = vld [vmem:[%s2999_s3 + $0xf8] sm:$0xff]  ;;  %v480_v57 = vld [vmem:[%s2999_s3 + $0xd0] sm:$0xff]  ;;  %v479_v60 = vld [vmem:[%s2999_s3 + $0xc8] sm:$0xff] }
  0x19   :  { %2376 = vmatpush.bf16.msra.mxu2 %v2282_v10  ;;  %2377 = vmatpush.bf16.msra.mxu3 %v2282_v10  ;;  %v489_v54 = vld [vmem:[%s2999_s3 + $0x118] sm:$0xff]  ;;  %v2294_v59 = vld [vmem:[%s3000_s4 + $0x30] sm:$0xff]  ;;  %v2293_v61 = vld [vmem:[%s3000_s4 + $0x28] sm:$0xff] }
  0x1a   :  { %507 = vperm.xlu1 %2389, %v457_v16   ;;  %v2295_v58 = vld [vmem:[%s3000_s4 + $0x38] sm:$0xff]  ;;  %v2268_v62 = vld [vmem:[%s2996_s0 + $0x30] sm:$0xff]  ;;  %v2292_v63 = vld [vmem:[%s3000_s4 + $0x20] sm:$0xff] }
  0x1b   :  { %2375 = vmatpush.bf16.msra.mxu1 %v2282_v10  ;;  %v488_v0 = vld [vmem:[%s2999_s3 + $0x110] sm:$0xff]  ;;  %v2291_v1 = vld [vmem:[%s3000_s4 + $0x18] sm:$0xff]  ;;  %v2289_v4 = vld [vmem:[%s3000_s4 + $0x8] sm:$0xff] }
  0x1c   :  { %253 = vmatpush.bf16.msra.mxu0 %v2281_v11  ;;  %542 = vperm.xlu2 %2390, %v464_v29   ;;  %v2290_v2 = vld [vmem:[%s3000_s4 + $0x10] sm:$0xff]  ;;  %v481_v3 = vld [vmem:[%s2999_s3 + $0xd8] sm:$0xff]  ;;  %v2288_v6 = vld [vmem:[%s3000_s4] sm:$0xff] }
  0x1d   :  { %2379 = vmatpush.bf16.msra.mxu2 %v2281_v11  ;;  %2380 = vmatpush.bf16.msra.mxu3 %v2281_v11  ;;  %v2269_v5 = vld [vmem:[%s2996_s0 + $0x38] sm:$0xff]  ;;  %v2302_v8 = vld [vmem:[%s3000_s4 + $0x70] sm:$0xff]  ;;  %v2683_v9 = vld [vmem:[%s2998_s2] ss:$0 sm:$0xff] }
  0x1e   :  { %547 = vperm.xlu0 %2388, %v465_v17   ;;  %v2303_v7 = vld [vmem:[%s3000_s4 + $0x78] sm:$0xff]  ;;  %v2301_v10 = vld [vmem:[%s3000_s4 + $0x68] sm:$0xff] }
  0x1f   :  { %2378 = vmatpush.bf16.msra.mxu1 %v2281_v11  ;;  %v2270_v11 = vld [vmem:[%s2996_s0 + $0x40] sm:$0xff]  ;;  %v2299_v17 = vld [vmem:[%s3000_s4 + $0x58] sm:$0xff] }
  0x20   :  { %254 = vmatpush.bf16.msra.mxu0 %v2280_v14 }
  0x21   :  { %2382 = vmatpush.bf16.msra.mxu2 %v2280_v14  ;;  %2383 = vmatpush.bf16.msra.mxu3 %v2280_v14 }
  0x22   :  { %522 = vperm.xlu1 %2389, %v460_v20  }
  0x23   :  { %255 = vmatmul.bf16.vlgmr.msra.gmra.mxu0 %v2262_v15  ;;  %2381 = vmatpush.bf16.msra.mxu1 %v2280_v14  ;;  %v2300_v15 = vld [vmem:[%s3000_s4 + $0x60] sm:$0xff] }
  0x24   :  { %315 = vmatmul.bf16.vlgmr.msra.gmra.mxu2 %v2274_v21  ;;  %330 = vmatmul.bf16.vlgmr.msra.gmra.mxu3 %v2277_v22  ;;  %v2298_v22 = vld [vmem:[%s3000_s4 + $0x50] sm:$0xff] }
  0x25   :  { %527 = vperm.xlu2 %2390, %v461_v35   ;;  %914 = vmatpush.bf16.msrb.mxu2 %v2295_v58 }
  0x26   :  { %572 = vperm.xlu0 %2388, %v470_v23   ;;  %300 = vmatmul.bf16.vlgmr.msra.gmra.mxu1 %v2271_v24 }
  0x27   :  { %835 = vmatpush.bf16.msrb.mxu1 %v2303_v7 }
  0x29   :  { %915 = vmatpush.bf16.msrb.mxu2 %v2294_v59 }
  0x2a   :  { %577 = vperm.xlu1 %2389, %v471_v26  }
  0x2b   :  { %836 = vmatpush.bf16.msrb.mxu1 %v2302_v8 }
  0x2d   :  { %592 = vperm.xlu2 %2390, %v474_v39   ;;  %916 = vmatpush.bf16.msrb.mxu2 %v2293_v61  ;;  %v2311_v39 = vld [vmem:[%s3000_s4 + $0xb8] sm:$0xff] }
  0x2e   :  { %597 = vperm.xlu0 %2388, %v475_v27   ;;  %v2297_v27 = vld [vmem:[%s3000_s4 + $0x48] sm:$0xff]  ;;  %1010 = vmatpush.bf16.msrb.mxu3 %v2311_v39  ;;  %v2307_v61 = vld [vmem:[%s3000_s4 + $0x98] sm:$0xff] }
  0x2f   :  { %837 = vmatpush.bf16.msrb.mxu1 %v2301_v10 }
  0x31   :  { %917 = vmatpush.bf16.msrb.mxu2 %v2292_v63 }
  0x32   :  { %552 = vperm.xlu1 %2389, %v466_v30  }
  0x33   :  { %260 = vmatmul.bf16.gmra.mxu0 %v2263_v18  ;;  %838 = vmatpush.bf16.msrb.mxu1 %v2300_v15 }
  0x34   :  { %320 = vmatmul.bf16.gmra.mxu2 %v2275_v31  ;;  %335 = vmatmul.bf16.gmra.mxu3 %v2278_v32 }
  0x35   :  { %557 = vperm.xlu2 %2390, %v467_v45   ;;  %918 = vmatpush.bf16.msrb.mxu2 %v2291_v1 }
  0x36   :  { %582 = vperm.xlu0 %2388, %v472_v33   ;;  %305 = vmatmul.bf16.gmra.mxu1 %v2272_v34  ;;  %v2296_v34 = vld [vmem:[%s3000_s4 + $0x40] sm:$0xff] }
  0x37   :  { %839 = vmatpush.bf16.msrb.mxu1 %v2299_v17 }
  0x39   :  { %919 = vmatpush.bf16.msrb.mxu2 %v2290_v2  ;;  %v2306_v2 = vld [vmem:[%s3000_s4 + $0x90] sm:$0xff] }
  0x3a   :  { %587 = vperm.xlu1 %2389, %v473_v36  }
  0x3b   :  { %840 = vmatpush.bf16.msrb.mxu1 %v2298_v22  ;;  %v2319_v22 = vld [vmem:[%s3000_s4 + $0xf8] sm:$0xff] }
  0x3d   :  { %602 = vperm.xlu2 %2390, %v476_v49   ;;  %920 = vmatpush.bf16.msrb.mxu2 %v2289_v4  ;;  %v2309_v49 = vld [vmem:[%s3000_s4 + $0xa8] sm:$0xff] }
  0x3e   :  { %607 = vperm.xlu0 %2388, %v477_v37  }
  0x3f   :  { %841 = vmatpush.bf16.msrb.mxu1 %v2297_v27 }
  0x41   :  { %921 = vmatpush.bf16.msrb.mxu2 %v2288_v6  ;;  %v2305_v6 = vld [vmem:[%s3000_s4 + $0x88] sm:$0xff] }
  0x42   :  { %562 = vperm.xlu1 %2389, %v468_v40  }
  0x43   :  { %265 = vmatmul.bf16.gmra.mxu0 %v2264_v28  ;;  %842 = vmatpush.bf16.msrb.mxu1 %v2296_v34 }
  0x44   :  { %325 = vmatmul.bf16.gmra.mxu2 %v2276_v41  ;;  %340 = vmatmul.bf16.gmra.mxu3 %v2279_v42 }
  0x45   :  { %567 = vperm.xlu2 %2390, %v469_v52  }
  0x46   :  { %632 = vperm.xlu0 %2388, %v482_v43   ;;  %310 = vmatmul.bf16.gmra.mxu1 %v2273_v44  ;;  %v2310_v44 = vld [vmem:[%s3000_s4 + $0xb0] sm:$0xff] }
  0x47   :  { %1011 = vmatpush.bf16.msrb.mxu3 %v2310_v44  ;;  %1110 = vmatpush.bf16.msra.mxu1 %v2319_v22  ;;  %v2316_v44 = vld [vmem:[%s3000_s4 + $0xe0] sm:$0xff] }
  0x4a   :  { %637 = vperm.xlu1 %2389, %v483_v46  }
  0x4b   :  { %1012 = vmatpush.bf16.msrb.mxu3 %v2309_v49 }
  0x4d   :  { %652 = vperm.xlu2 %2390, %v486_v56   ;;  %v2308_v56 = vld [vmem:[%s3000_s4 + $0xa0] sm:$0xff] }
  0x4e   :  { %657 = vperm.xlu0 %2388, %v487_v47  }
  0x4f   :  { %1013 = vmatpush.bf16.msrb.mxu3 %v2308_v56 }
  0x52   :  { %612 = vperm.xlu1 %2389, %v478_v50  }
  0x53   :  { %270 = vmatmul.bf16.gmra.mxu0 %v2265_v38  ;;  %1014 = vmatpush.bf16.msrb.mxu3 %v2307_v61  ;;  %v2314_v61 = vld [vmem:[%s3000_s4 + $0xd0] sm:$0xff] }
  0x55   :  { %617 = vperm.xlu2 %2390, %v479_v60  }
  0x56   :  { %642 = vperm.xlu0 %2388, %v484_v51  }
  0x57   :  { %1015 = vmatpush.bf16.msrb.mxu3 %v2306_v2 }
  0x5a   :  { %647 = vperm.xlu1 %2389, %v485_v53  }
  0x5b   :  { %1016 = vmatpush.bf16.msrb.mxu3 %v2305_v6  ;;  %v2313_v6 = vld [vmem:[%s3000_s4 + $0xc8] sm:$0xff] }
  0x5d   :  { %662 = vperm.xlu2 %2390, %v488_v0  }
  0x5e   :  { %667 = vperm.xlu0 %2388, %v489_v54  }
  0x62   :  { %622 = vperm.xlu1 %2389, %v480_v57  }
  0x63   :  { %275 = vmatmul.bf16.gmra.mxu0 %v2266_v48 }
  0x65   :  { %627 = vperm.xlu2 %2390, %v481_v3  }
  0x66   :  { %v513_v52 = vpop.permute.xlu2 %512 }
  0x6e   :  { %v518_v0 = vpop.permute.xlu2 %517 }
  0x73   :  { %280 = vmatmul.bf16.gmra.mxu0 %v2267_v55 }
  0x76   :  { %v2743_v17 = vpop.permute.xlu2 %542 }
  0x78   :  { %v493_v14 = vpop.permute.xlu0 %492 }
  0x7c   :  { %v2698_v19 = vpop.permute.xlu1 %532 }
  0x7f   :  { %v528_v34 = vpop.permute.xlu2 %527 }
  0x80   :  { %v498_v25 = vpop.permute.xlu0 %497 }
  0x83   :  { %285 = vmatmul.bf16.gmra.mxu0 %v2268_v62 }
  0x84   :  { %v2708_v33 = vpop.permute.xlu1 %537 }
  0x88   :  { %v503_v40 = vpop.permute.xlu0 %502 }
  0x8c   :  { %v508_v47 = vpop.permute.xlu1 %507 }
  0x90   :  { %v2737_v10 = vpop.permute.xlu0 %547 }
  0x93   :  { %290 = vmatmul.bf16.gmra.mxu0 %v2269_v5 }
  0x98   :  { %v2751_v27 = vpop.permute.xlu0 %572 }
  0xa0   :  { %v256_v12 = vpop.f32.mrf.mxu0  ;;  %v2775_v49 = vpop.permute.xlu0 %597 }
  0xa1   :  { %v257_v13 = vadd.f32 %v2683_v9, %v256_v12 }
  0xa3   :  { %v382_v16 = vmul.f32 0.2, %v257_v13  ;;  %295 = vmatmul.bf16.gmra.mxu0 %v2270_v11  ;;  %vm346_vm0 = vcmp.gt.f32.partialorder %v257_v13, 0.0 }
  0xa5   :  { %v418_v18 = vsel %vm346_vm0, %v257_v13, %v382_v16 }
  0xa6   :  { %v670_v23 = vmul.f32 %v493_v14, %v418_v18  ;;  %v2304_v14 = vld [vmem:[%s3000_s4 + $0x80] sm:$0xff] }
  0xa7   :  { %1017 = vmatpush.bf16.msrb.mxu3 %v2304_v14 }
  0xa8   :  { %v258_v20 = vpop.f32.mrf.mxu0  ;;  %v706_v28 = vpack.c.bf16 %v670_v23, %v670_v23  ;;  %v2335_v23 = vld [vmem:[%s3000_s4 + $0x178] sm:$0xff] }
  0xa9   :  { %v259_v21 = vadd.f32 %v2683_v9, %v258_v20 }
  0xaa   :  { %v858_v35 = vunpack.c.l.b16 %v706_v28 }
  0xab   :  { %v383_v24 = vmul.f32 0.2, %v259_v21  ;;  %vm347_vm1 = vcmp.gt.f32.partialorder %v259_v21, 0.0  ;;  %1310 = vmatpush.bf16.msra.mxu3 %v2335_v23 }
  0xad   :  { %v419_v26 = vsel %vm347_vm1, %v259_v21, %v383_v24  ;;  %v523_v21 = vpop.permute.xlu1 %522 }
  0xae   :  { %v671_v29 = vmul.f32 %v498_v25, %v419_v26  ;;  %v301_v26 = vpop.f32.mrf.mxu1 }
  0xb0   :  { %v707_v30 = vpack.c.bf16 %v671_v29, %v671_v29  ;;  %v261_v31 = vpop.f32.mrf.mxu0  ;;  %v2318_v29 = vld [vmem:[%s3000_s4 + $0xf0] sm:$0xff] }
  0xb1   :  { %v262_v32 = vadd.f32 %v2683_v9, %v261_v31  ;;  %1111 = vmatpush.bf16.msra.mxu1 %v2318_v29  ;;  %v2343_v29 = vld [vmem:[%s3000_s4 + $0x1b8] sm:$0xff] }
  0xb2   :  { %v859_v36 = vunpack.c.l.b16 %v707_v30  ;;  %v2334_v30 = vld [vmem:[%s3000_s4 + $0x170] sm:$0xff] }
  0xb3   :  { %v384_v37 = vmul.f32 0.2, %v262_v32  ;;  %vm348_vm2 = vcmp.gt.f32.partialorder %v262_v32, 0.0  ;;  %1311 = vmatpush.bf16.msra.mxu3 %v2334_v30  ;;  %v2359_v30 = vld [vmem:[%s3000_s4 + $0x238] sm:$0xff] }
  0xb4   :  { %v862_v38 = vpack.c.b16 %v859_v36, %v858_v35  ;;  %v2317_v36 = vld [vmem:[%s3000_s4 + $0xe8] sm:$0xff] }
  0xb5   :  { %v420_v41 = vsel %vm348_vm2, %v262_v32, %v384_v37  ;;  %v2333_v37 = vld [vmem:[%s3000_s4 + $0x168] sm:$0xff]  ;;  %1112 = vmatpush.bf16.msra.mxu1 %v2317_v36  ;;  %v2822_v36 = vpop.f32.mrf.mxu3 }
  0xb6   :  { %922 = vmatmul.bf16.vlgmr.msrb.gmra.mxu2 %v862_v38  ;;  %v672_v45 = vmul.f32 %v503_v40, %v420_v41  ;;  %v2766_v40 = vpop.permute.xlu1 %577 }
  0xb7   :  { %1312 = vmatpush.bf16.msra.mxu3 %v2333_v37 }
  0xb8   :  { %v263_v42 = vpop.f32.mrf.mxu0  ;;  %v708_v50 = vpack.c.bf16 %v672_v45, %v672_v45  ;;  %v2332_v45 = vld [vmem:[%s3000_s4 + $0x160] sm:$0xff] }
  0xb9   :  { %v264_v43 = vadd.f32 %v2683_v9, %v263_v42  ;;  %1113 = vmatpush.bf16.msra.mxu1 %v2316_v44  ;;  %v2358_v44 = vld [vmem:[%s3000_s4 + $0x230] sm:$0xff] }
  0xba   :  { %v860_v57 = vunpack.c.l.b16 %v708_v50  ;;  %v302_v50 = vadd.f32 %v2683_v9, %v301_v26 }
  0xbb   :  { %v385_v46 = vmul.f32 0.2, %v264_v43  ;;  %vm349_vm3 = vcmp.gt.f32.partialorder %v264_v43, 0.0  ;;  %1313 = vmatpush.bf16.msra.mxu3 %v2332_v45 }
  0xbc   :  { %vm364_vm9 = vcmp.gt.f32.partialorder %v302_v50, 0.0 }
  0xbd   :  { %v421_v48 = vsel %vm349_vm3, %v264_v43, %v385_v46  ;;  %v303_v46 = vpop.f32.mrf.mxu1 }
  0xbe   :  { %v673_v51 = vmul.f32 %v508_v47, %v421_v48 }
  0xc0   :  { %v709_v53 = vpack.c.bf16 %v673_v51, %v673_v51  ;;  %v266_v54 = vpop.f32.mrf.mxu0 }
  0xc1   :  { %v267_v55 = vadd.f32 %v2683_v9, %v266_v54  ;;  %v2331_v54 = vld [vmem:[%s3000_s4 + $0x158] sm:$0xff] }
  0xc2   :  { %v861_v58 = vunpack.c.l.b16 %v709_v53  ;;  %v2315_v53 = vld [vmem:[%s3000_s4 + $0xd8] sm:$0xff]  ;;  %1314 = vmatpush.bf16.msra.mxu3 %v2331_v54 }
  0xc3   :  { %v386_v59 = vmul.f32 0.2, %v267_v55  ;;  %vm350_vm4 = vcmp.gt.f32.partialorder %v267_v55, 0.0  ;;  %1114 = vmatpush.bf16.msra.mxu1 %v2315_v53  ;;  %v2357_v53 = vld [vmem:[%s3000_s4 + $0x228] sm:$0xff] }
  0xc4   :  { %v863_v60 = vpack.c.b16 %v861_v58, %v860_v57  ;;  %v2784_v58 = vpop.permute.xlu1 %552 }
  0xc5   :  { %v422_v62 = vsel %vm350_vm4, %v267_v55, %v386_v59  ;;  %v400_v55 = vmul.f32 0.2, %v302_v50  ;;  %v304_v59 = vadd.f32 %v2683_v9, %v303_v46  ;;  %v306_v2 = vpop.f32.mrf.mxu1 }
  0xc6   :  { %927 = vmatmul.bf16.gmra.mxu2 %v863_v60  ;;  %v674_v3 = vmul.f32 %v513_v52, %v422_v62  ;;  %v2330_v62 = vld [vmem:[%s3000_s4 + $0x150] sm:$0xff] }
  0xc7   :  { %1115 = vmatpush.bf16.msra.mxu1 %v2314_v61  ;;  %1315 = vmatpush.bf16.msra.mxu3 %v2330_v62  ;;  %vm365_vm11 = vcmp.gt.f32.partialorder %v304_v59, 0.0 }
  0xc8   :  { %v268_v63 = vpop.f32.mrf.mxu0  ;;  %v710_v8 = vpack.c.bf16 %v674_v3, %v674_v3  ;;  %v583_v3 = vpop.permute.xlu0 %582 }
  0xc9   :  { %v269_v1 = vadd.f32 %v2683_v9, %v268_v63 }
  0xca   :  { %v779_v15 = vunpack.c.l.b16 %v710_v8 }
  0xcb   :  { %vm351_vm5 = vcmp.gt.f32.partialorder %v269_v1, 0.0  ;;  %v387_v4 = vmul.f32 0.2, %v269_v1  ;;  %1116 = vmatpush.bf16.msra.mxu1 %v2313_v6 }
  0xcc   :  { %v588_v23 = vpop.permute.xlu1 %587 }
  0xcd   :  { %v423_v5 = vsel %vm351_vm5, %v269_v1, %v387_v4  ;;  %v401_v4 = vmul.f32 0.2, %v304_v59 }
  0xce   :  { %v675_v7 = vmul.f32 %v518_v0, %v423_v5  ;;  %v436_v0 = vsel %vm364_vm9, %v302_v50, %v400_v55 }
  0xcf   :  { %v688_v8 = vmul.f32 %v583_v3, %v436_v0  ;;  %v2340_v0 = vld [vmem:[%s3000_s4 + $0x1a0] sm:$0xff] }
  0xd0   :  { %v271_v11 = vpop.f32.mrf.mxu0  ;;  %v711_v12 = vpack.c.bf16 %v675_v7, %v675_v7  ;;  %v2329_v7 = vld [vmem:[%s3000_s4 + $0x148] sm:$0xff] }
  0xd1   :  { %v272_v13 = vadd.f32 %v2683_v9, %v271_v11  ;;  %1316 = vmatpush.bf16.msra.mxu3 %v2329_v7 }
  0xd2   :  { %v780_v16 = vunpack.c.l.b16 %v711_v12  ;;  %v2802_v12 = vpop.permute.xlu2 %592 }
  0xd3   :  { %v388_v18 = vmul.f32 0.2, %v272_v13  ;;  %vm352_vm6 = vcmp.gt.f32.partialorder %v272_v13, 0.0 }
  0xd4   :  { %v783_v20 = vpack.c.b16 %v780_v16, %v779_v15  ;;  %v437_v15 = vsel %vm365_vm11, %v304_v59, %v401_v4 }
  0xd5   :  { %v424_v24 = vsel %vm352_vm6, %v272_v13, %v388_v18  ;;  %v2312_v18 = vld [vmem:[%s3000_s4 + $0xc0] sm:$0xff]  ;;  %v689_v26 = vmul.f32 %v588_v23, %v437_v15  ;;  %v2876_v15 = vpop.f32.mrf.mxu2  ;;  %v2354_v23 = vld [vmem:[%s3000_s4 + $0x210] sm:$0xff] }
  0xd6   :  { %843 = vmatmul.bf16.vlgmr.msrb.gmra.mxu1 %v783_v20  ;;  %v676_v31 = vmul.f32 %v523_v21, %v424_v24  ;;  %v2328_v20 = vld [vmem:[%s3000_s4 + $0x140] sm:$0xff]  ;;  %v724_v21 = vpack.c.bf16 %v688_v8, %v688_v8 }
  0xd7   :  { %1117 = vmatpush.bf16.msra.mxu1 %v2312_v18  ;;  %1317 = vmatpush.bf16.msra.mxu3 %v2328_v20 }
  0xd8   :  { %v273_v25 = vpop.f32.mrf.mxu0  ;;  %v712_v39 = vpack.c.bf16 %v676_v31, %v676_v31  ;;  %v2820_v31 = vunpack.c.l.b16 %v724_v21 }
  0xd9   :  { %v274_v28 = vadd.f32 %v2683_v9, %v273_v25 }
  0xda   :  { %v781_v47 = vunpack.c.l.b16 %v712_v39  ;;  %v2826_v39 = vpop.permute.xlu2 %557 }
  0xdb   :  { %vm353_vm7 = vcmp.gt.f32.partialorder %v274_v28, 0.0  ;;  %v389_v32 = vmul.f32 0.2, %v274_v28  ;;  %1410 = vmatpush.bf16.msrb.mxu1 %v2343_v29 }
  0xdd   :  { %v425_v35 = vsel %vm353_vm7, %v274_v28, %v389_v32  ;;  %v2327_v28 = vld [vmem:[%s3000_s4 + $0x138] sm:$0xff]  ;;  %v308_v32 = vpop.f32.mrf.mxu1 }
  0xde   :  { %v677_v38 = vmul.f32 %v528_v34, %v425_v35  ;;  %v725_v34 = vpack.c.bf16 %v689_v26, %v689_v26  ;;  %1210 = vmatpush.bf16.msra.mxu2 %v2327_v28  ;;  %v309_v50 = vadd.f32 %v2683_v9, %v308_v32  ;;  %v563_v32 = vpop.permute.xlu1 %562 }
  0xe0   :  { %v276_v41 = vpop.f32.mrf.mxu0  ;;  %v713_v42 = vpack.c.bf16 %v677_v38, %v677_v38  ;;  %v2824_v38 = vunpack.c.l.b16 %v725_v34  ;;  %v403_v61 = vmul.f32 0.2, %v309_v50  ;;  %vm367_vm15 = vcmp.gt.f32.partialorder %v309_v50, 0.0 }
  0xe1   :  { %v277_v43 = vadd.f32 %v2683_v9, %v276_v41 }
  0xe2   :  { %v782_v48 = vunpack.c.l.b16 %v713_v42  ;;  %v2326_v42 = vld [vmem:[%s3000_s4 + $0x130] sm:$0xff]  ;;  %v1159_v46 = vpack.c.b16 %v2824_v38, %v2820_v31  ;;  %v2865_v4 = vpop.permute.xlu2 %602  ;;  %v439_v8 = vsel %vm367_vm15, %v309_v50, %v403_v61 }
  0xe3   :  { %v390_v51 = vmul.f32 0.2, %v277_v43  ;;  %vm354_vm8 = vcmp.gt.f32.partialorder %v277_v43, 0.0  ;;  %1211 = vmatpush.bf16.msra.mxu2 %v2326_v42  ;;  %v691_v18 = vmul.f32 %v2775_v49, %v439_v8  ;;  %v608_v42 = vpop.permute.xlu0 %607 }
  0xe4   :  { %v784_v52 = vpack.c.b16 %v782_v48, %v781_v47  ;;  %v307_v48 = vadd.f32 %v2683_v9, %v306_v2 }
  0xe5   :  { %v426_v56 = vsel %vm354_vm8, %v277_v43, %v390_v51  ;;  %v2342_v43 = vld [vmem:[%s3000_s4 + $0x1b0] sm:$0xff]  ;;  %v727_v28 = vpack.c.bf16 %v691_v18, %v691_v18 }
  0xe6   :  { %848 = vmatmul.bf16.gmra.mxu1 %v784_v52  ;;  %v678_v63 = vmul.f32 %v2698_v19, %v426_v56  ;;  %v2325_v52 = vld [vmem:[%s3000_s4 + $0x128] sm:$0xff]  ;;  %v402_v56 = vmul.f32 0.2, %v307_v48  ;;  %vm366_vm14 = vcmp.gt.f32.partialorder %v307_v48, 0.0 }
  0xe7   :  { %1411 = vmatpush.bf16.msrb.mxu1 %v2342_v43  ;;  %1212 = vmatpush.bf16.msra.mxu2 %v2325_v52 }
  0xe8   :  { %v278_v57 = vpop.f32.mrf.mxu0  ;;  %v714_v11 = vpack.c.bf16 %v678_v63, %v678_v63  ;;  %v2324_v63 = vld [vmem:[%s3000_s4 + $0x120] sm:$0xff]  ;;  %v438_v7 = vsel %vm366_vm14, %v307_v48, %v402_v56 }
  0xe9   :  { %v279_v60 = vadd.f32 %v2683_v9, %v278_v57  ;;  %v311_v57 = vpop.f32.mrf.mxu1 }
  0xea   :  { %v312_v29 = vadd.f32 %v2683_v9, %v311_v57 }
  0xeb   :  { %vm355_vm10 = vcmp.gt.f32.partialorder %v279_v60, 0.0  ;;  %v391_v1 = vmul.f32 0.2, %v279_v60  ;;  %1213 = vmatpush.bf16.msra.mxu2 %v2324_v63 }
  0xec   :  { %v404_v48 = vmul.f32 0.2, %v312_v29  ;;  %vm368_vm2 = vcmp.gt.f32.partialorder %v312_v29, 0.0 }
  0xed   :  { %v427_v5 = vsel %vm355_vm10, %v279_v60, %v391_v1  ;;  %v2863_v1 = vpop.f32.mrf.mxu3 }
  0xee   :  { %v679_v19 = vmul.f32 %v2708_v33, %v427_v5  ;;  %v954_v33 = vunpack.c.l.b16 %v714_v11  ;;  %v2339_v11 = vld [vmem:[%s3000_s4 + $0x198] sm:$0xff] }
  0xf0   :  { %v281_v13 = vpop.f32.mrf.mxu0  ;;  %v715_v14 = vpack.c.bf16 %v679_v19, %v679_v19  ;;  %v2323_v19 = vld [vmem:[%s3000_s4 + $0x118] sm:$0xff] }
  0xf1   :  { %v282_v16 = vadd.f32 %v2683_v9, %v281_v13  ;;  %v2355_v13 = vld [vmem:[%s3000_s4 + $0x218] sm:$0xff]  ;;  %1214 = vmatpush.bf16.msra.mxu2 %v2323_v19 }
  0xf2   :  { %v955_v22 = vunpack.c.l.b16 %v715_v14 }
  0xf3   :  { %v392_v24 = vmul.f32 0.2, %v282_v16  ;;  %vm356_vm12 = vcmp.gt.f32.partialorder %v282_v16, 0.0 }
  0xf4   :  { %v958_v25 = vpack.c.b16 %v955_v22, %v954_v33  ;;  %v2322_v33 = vld [vmem:[%s3000_s4 + $0x110] sm:$0xff] }
  0xf5   :  { %v428_v35 = vsel %vm356_vm12, %v282_v16, %v392_v24  ;;  %v690_v16 = vmul.f32 %v2802_v12, %v438_v7  ;;  %v2338_v22 = vld [vmem:[%s3000_s4 + $0x190] sm:$0xff]  ;;  %v313_v24 = vpop.f32.mrf.mxu1  ;;  %1215 = vmatpush.bf16.msra.mxu2 %v2322_v33  ;;  %v2891_v26 = vpop.f32.mrf.mxu3 }
  0xf6   :  { %1018 = vmatmul.bf16.vlgmr.msrb.gmra.mxu3 %v958_v25  ;;  %v680_v45 = vmul.f32 %v2743_v17, %v428_v35  ;;  %v2341_v17 = vld [vmem:[%s3000_s4 + $0x1a8] sm:$0xff]  ;;  %v314_v34 = vadd.f32 %v2683_v9, %v313_v24 }
  0xf7   :  { %1610 = vmatpush.bf16.msrb.mxu3 %v2359_v30  ;;  %1412 = vmatpush.bf16.msrb.mxu1 %v2341_v17  ;;  %v726_v25 = vpack.c.bf16 %v690_v16, %v690_v16  ;;  %v2894_v30 = vpop.permute.xlu2 %567  ;;  %v317_v16 = vadd.f32 %v2683_v9, %v2876_v15 }
  0xf8   :  { %v283_v37 = vpop.f32.mrf.mxu0  ;;  %v716_v55 = vpack.c.bf16 %v680_v45, %v680_v45  ;;  %v405_v52 = vmul.f32 0.2, %v314_v34  ;;  %vm369_vm3 = vcmp.gt.f32.partialorder %v314_v34, 0.0 }
  0xf9   :  { %v284_v41 = vadd.f32 %v2683_v9, %v283_v37  ;;  %v2337_v37 = vld [vmem:[%s3000_s4 + $0x188] sm:$0xff]  ;;  %v1254_v45 = vunpack.c.l.b16 %v726_v25  ;;  %v406_v25 = vmul.f32 0.2, %v317_v16  ;;  %vm370_vm8 = vcmp.gt.f32.partialorder %v317_v16, 0.0 }
  0xfa   :  { %v956_v2 = vunpack.c.l.b16 %v716_v55  ;;  %v318_v55 = vpop.f32.mrf.mxu2  ;;  %v441_v63 = vsel %vm369_vm3, %v314_v34, %v405_v52 }
  0xfb   :  { %vm357_vm13 = vcmp.gt.f32.partialorder %v284_v41, 0.0  ;;  %v393_v47 = vmul.f32 0.2, %v284_v41  ;;  %1611 = vmatpush.bf16.msrb.mxu3 %v2358_v44  ;;  %1413 = vmatpush.bf16.msrb.mxu1 %v2340_v0  ;;  %v2351_v0 = vld [vmem:[%s3000_s4 + $0x1f8] sm:$0xff]  ;;  %v693_v19 = vmul.f32 %v608_v42, %v441_v63 }
  0xfd   :  { %v429_v51 = vsel %vm357_vm13, %v284_v41, %v393_v47  ;;  %v2353_v41 = vld [vmem:[%s3000_s4 + $0x208] sm:$0xff]  ;;  %v1255_v47 = vunpack.c.l.b16 %v727_v28 }
  0xfe   :  { %v681_v54 = vmul.f32 %v2737_v10, %v429_v51  ;;  %v2356_v10 = vld [vmem:[%s3000_s4 + $0x220] sm:$0xff] }
  0xff   :  { %1612 = vmatpush.bf16.msrb.mxu3 %v2357_v53  ;;  %1414 = vmatpush.bf16.msrb.mxu1 %v2339_v11  ;;  %v2320_v53 = vld [vmem:[%s3000_s4 + $0x100] sm:$0xff]  ;;  %v1258_v61 = vpack.c.b16 %v1255_v47, %v1254_v45 }
 0x100   :  { %v286_v59 = vpop.f32.mrf.mxu0  ;;  %v717_v60 = vpack.c.bf16 %v681_v54, %v681_v54  ;;  %v2336_v54 = vld [vmem:[%s3000_s4 + $0x180] sm:$0xff] }
 0x101   :  { %v287_v62 = vadd.f32 %v2683_v9, %v286_v59 }
 0x102   :  { %v957_v3 = vunpack.c.l.b16 %v717_v60 }
 0x103   :  { %v394_v5 = vmul.f32 0.2, %v287_v62  ;;  %vm358_vm0 = vcmp.gt.f32.partialorder %v287_v62, 0.0  ;;  %1613 = vmatpush.bf16.msrb.mxu3 %v2356_v10  ;;  %1415 = vmatpush.bf16.msrb.mxu1 %v2338_v22  ;;  %v338_v10 = vpop.f32.mrf.mxu3  ;;  %v729_v22 = vpack.c.bf16 %v693_v19, %v693_v19 }
 0x104   :  { %v959_v6 = vpack.c.b16 %v957_v3, %v956_v2  ;;  %v653_v2 = vpop.permute.xlu2 %652  ;;  %v2920_v3 = vpop.permute.xlu1 %637  ;;  %v339_v24 = vadd.f32 %v2683_v9, %v338_v10 }
 0x105   :  { %v430_v14 = vsel %vm358_vm0, %v287_v62, %v394_v5  ;;  %v440_v62 = vsel %vm368_vm2, %v312_v29, %v404_v48 }
 0x106   :  { %1023 = vmatmul.bf16.gmra.mxu3 %v959_v6  ;;  %v682_v12 = vmul.f32 %v2784_v58, %v430_v14  ;;  %v2321_v58 = vld [vmem:[%s3000_s4 + $0x108] sm:$0xff]  ;;  %v2922_v6 = vpop.permute.xlu0 %632  ;;  %v692_v8 = vmul.f32 %v2865_v4, %v440_v62  ;;  %v319_v4 = vadd.f32 %v2683_v9, %v318_v55  ;;  %vm379_vm9 = vcmp.gt.f32.partialorder %v339_v24, 0.0  ;;  %v2347_v55 = vld [vmem:[%s3000_s4 + $0x1d8] sm:$0xff] }
 0x107   :  { %1614 = vmatpush.bf16.msrb.mxu3 %v2355_v13  ;;  %1216 = vmatpush.bf16.msra.mxu2 %v2321_v58  ;;  %v2350_v13 = vld [vmem:[%s3000_s4 + $0x1f0] sm:$0xff]  ;;  %v1257_v58 = vunpack.c.l.b16 %v729_v22 }
 0x108   :  { %v288_v20 = vpop.f32.mrf.mxu0  ;;  %v718_v43 = vpack.c.bf16 %v682_v12, %v682_v12  ;;  %1416 = vmatpush.bf16.msrb.mxu1 %v2337_v37  ;;  %v728_v33 = vpack.c.bf16 %v692_v8, %v692_v8  ;;  %v407_v28 = vmul.f32 0.2, %v319_v4  ;;  %vm371_vm7 = vcmp.gt.f32.partialorder %v319_v4, 0.0 }
 0x109   :  { %v289_v21 = vadd.f32 %v2683_v9, %v288_v20  ;;  %v2349_v20 = vld [vmem:[%s3000_s4 + $0x1e8] sm:$0xff] }
 0x10a   :  { %v1054_v56 = vunpack.c.l.b16 %v718_v43  ;;  %v415_v43 = vmul.f32 0.2, %v339_v24 }
 0x10b   :  { %vm359_vm1 = vcmp.gt.f32.partialorder %v289_v21, 0.0  ;;  %v395_v49 = vmul.f32 0.2, %v289_v21  ;;  %1615 = vmatpush.bf16.msrb.mxu3 %v2354_v23  ;;  %1217 = vmatpush.bf16.msra.mxu2 %v2320_v53  ;;  %v337_v23 = vadd.f32 %v2683_v9, %v2891_v26  ;;  %v341_v29 = vpop.f32.mrf.mxu3  ;;  %v442_v53 = vsel %vm370_vm8, %v317_v16, %v406_v25 }
 0x10c   :  { %1417 = vmatpush.bf16.msrb.mxu1 %v2336_v54  ;;  %v613_v42 = vpop.permute.xlu1 %612  ;;  %vm1676_vm8 = vcmask 130112  }
 0x10d   :  { %v431_v35 = vsel %vm359_vm1, %v289_v21, %v395_v49  ;;  %v321_v21 = vpop.f32.mrf.mxu2  ;;  %v414_v37 = vmul.f32 0.2, %v337_v23  ;;  %vm378_vm6 = vcmp.gt.f32.partialorder %v337_v23, 0.0 }
 0x10e   :  { %v683_v44 = vmul.f32 %v2826_v39, %v431_v35  ;;  %v2352_v39 = vld [vmem:[%s3000_s4 + $0x200] sm:$0xff]  ;;  %v1256_v35 = vunpack.c.l.b16 %v728_v33 }
 0x10f   :  { %1616 = vmatpush.bf16.msrb.mxu3 %v2353_v41  ;;  %1510 = vmatpush.bf16.msrb.mxu2 %v2351_v0  ;;  %v618_v41 = vpop.permute.xlu2 %617  ;;  %v450_v52 = vsel %vm378_vm6, %v337_v23, %v414_v37  ;;  %v2346_v0 = vld [vmem:[%s3000_s4 + $0x1d0] sm:$0xff] }
 0x110   :  { %v719_v50 = vpack.c.bf16 %v683_v44, %v683_v44  ;;  %v291_v51 = vpop.f32.mrf.mxu0  ;;  %v658_v44 = vpop.permute.xlu0 %657 }
 0x111   :  { %v292_v17 = vadd.f32 %v2683_v9, %v291_v51  ;;  %v1259_v51 = vpack.c.b16 %v1257_v58, %v1256_v35 }
 0x112   :  { %v1055_v57 = vunpack.c.l.b16 %v719_v50 }
 0x113   :  { %v396_v59 = vmul.f32 0.2, %v292_v17  ;;  %vm360_vm4 = vcmp.gt.f32.partialorder %v292_v17, 0.0  ;;  %1617 = vmatpush.bf16.msrb.mxu3 %v2352_v39  ;;  %1511 = vmatpush.bf16.msrb.mxu2 %v2350_v13  ;;  %v451_v39 = vsel %vm379_vm9, %v339_v24, %v415_v43  ;;  %v343_v10 = vpop.f32.mrf.mxu3  ;;  %vm1681_vm9 = vcmask 1041409  }
 0x114   :  { %v1058_v60 = vpack.c.b16 %v1055_v57, %v1054_v56  ;;  %v702_v57 = vmul.f32 %v653_v2, %v450_v52  ;;  %v703_v62 = vmul.f32 %v658_v44, %v451_v39  ;;  %v2954_v19 = vpop.permute.xlu1 %647 }
 0x115   :  { %v432_v5 = vsel %vm360_vm4, %v292_v17, %v396_v59  ;;  %v443_v17 = vsel %vm371_vm7, %v319_v4, %v407_v28  ;;  %v323_v54 = vpop.f32.mrf.mxu2  ;;  %v342_v4 = vadd.f32 %v2683_v9, %v341_v29  ;;  %v2344_v29 = vld [vmem:[%s3000_s4 + $0x1c0] sm:$0xff] }
 0x116   :  { %1118 = vmatmul.bf16.vlgmr.msra.gmra.mxu1 %v1058_v60  ;;  %1318 = vmatmul.bf16.vlgmr.msra.gmra.mxu3 %v1258_v61  ;;  %v684_v14 = vmul.f32 %v563_v32, %v432_v5  ;;  %v695_v59 = vmul.f32 %v618_v41, %v443_v17  ;;  %v694_v60 = vmul.f32 %v613_v42, %v442_v53 }
 0x117   :  { %1512 = vmatpush.bf16.msrb.mxu2 %v2349_v20  ;;  %v663_v8 = vpop.permute.xlu2 %662  ;;  %v324_v13 = vadd.f32 %v2683_v9, %v323_v54  ;;  %v2345_v20 = vld [vmem:[%s3000_s4 + $0x1c8] sm:$0xff]  ;;  %v416_v35 = vmul.f32 0.2, %v342_v4  ;;  %vm380_vm14 = vcmp.gt.f32.partialorder %v342_v4, 0.0 }
 0x118   :  { %v293_v7 = vpop.f32.mrf.mxu0  ;;  %v720_v49 = vpack.c.bf16 %v684_v14, %v684_v14  ;;  %v731_v14 = vpack.c.bf16 %v695_v59, %v695_v59  ;;  %v730_v16 = vpack.c.bf16 %v694_v60, %v694_v60 }
 0x119   :  { %v294_v11 = vadd.f32 %v2683_v9, %v293_v7  ;;  %v322_v7 = vadd.f32 %v2683_v9, %v321_v21  ;;  %v344_v21 = vadd.f32 %v2683_v9, %v343_v10  ;;  %v409_v24 = vmul.f32 0.2, %v324_v13 }
 0x11a   :  { %v1056_v45 = vunpack.c.l.b16 %v720_v49  ;;  %v1354_v49 = vunpack.c.l.b16 %v730_v16  ;;  %vm373_vm12 = vcmp.gt.f32.partialorder %v324_v13, 0.0 }
 0x11b   :  { %vm361_vm5 = vcmp.gt.f32.partialorder %v294_v11, 0.0  ;;  %v397_v18 = vmul.f32 0.2, %v294_v11  ;;  %v417_v58 = vmul.f32 0.2, %v344_v21  ;;  %vm372_vm13 = vcmp.gt.f32.partialorder %v322_v7, 0.0 }
 0x11c   :  { %vm381_vm15 = vcmp.gt.f32.partialorder %v344_v21, 0.0  ;;  %v445_v43 = vsel %vm373_vm12, %v324_v13, %v409_v24  ;;  %v623_v44 = vpop.permute.xlu1 %622 }
 0x11d   :  { %v433_v12 = vsel %vm361_vm5, %v294_v11, %v397_v18  ;;  %v738_v11 = vpack.c.bf16 %v702_v57, %v702_v57  ;;  %v2957_v18 = vpop.permute.xlu0 %642  ;;  %v326_v25 = vpop.f32.mrf.mxu2 }
 0x11e   :  { %v685_v15 = vmul.f32 %v2894_v30, %v433_v12  ;;  %v2348_v30 = vld [vmem:[%s3000_s4 + $0x1e0] sm:$0xff]  ;;  %v408_v12 = vmul.f32 0.2, %v322_v7 }
 0x11f   :  { %1513 = vmatpush.bf16.msrb.mxu2 %v2348_v30  ;;  %v628_v30 = vpop.permute.xlu2 %627 }
 0x120   :  { %v296_v32 = vpop.f32.mrf.mxu0  ;;  %v721_v34 = vpack.c.bf16 %v685_v15, %v685_v15  ;;  %v1355_v15 = vunpack.c.l.b16 %v731_v14 }
 0x121   :  { %v297_v26 = vadd.f32 %v2683_v9, %v296_v32  ;;  %v1554_v32 = vunpack.c.l.b16 %v738_v11 }
 0x122   :  { %v1057_v47 = vunpack.c.l.b16 %v721_v34 }
 0x123   :  { %v398_v48 = vmul.f32 0.2, %v297_v26  ;;  %vm362_vm10 = vcmp.gt.f32.partialorder %v297_v26, 0.0  ;;  %1514 = vmatpush.bf16.msrb.mxu2 %v2347_v55 }
 0x124   :  { %v1059_v50 = vpack.c.b16 %v1057_v47, %v1056_v45  ;;  %v444_v45 = vsel %vm372_vm13, %v322_v7, %v408_v12  ;;  %v452_v47 = vsel %vm380_vm14, %v342_v4, %v416_v35  ;;  %v334_v4 = vadd.f32 %v2683_v9, %v2863_v1 }
 0x125   :  { %v434_v56 = vsel %vm362_vm10, %v297_v26, %v398_v48  ;;  %v668_v48 = vpop.permute.xlu0 %667  ;;  %v696_v52 = vmul.f32 %v623_v44, %v444_v45  ;;  %v704_v17 = vmul.f32 %v663_v8, %v452_v47  ;;  %v328_v54 = vpop.f32.mrf.mxu2  ;;  %vm1684_vm10 = vcmask 123904  }
 0x126   :  { %1123 = vmatmul.bf16.gmra.mxu1 %v1059_v50  ;;  %1323 = vmatmul.bf16.gmra.mxu3 %v1259_v51  ;;  %v686_v5 = vmul.f32 %v2751_v27, %v434_v56  ;;  %v739_v27 = vpack.c.bf16 %v703_v62, %v703_v62  ;;  %v453_v50 = vsel %vm381_vm15, %v344_v21, %v417_v58  ;;  %vm377_vm3 = vcmp.gt.f32.partialorder %v334_v4, 0.0 }
 0x127   :  { %1515 = vmatpush.bf16.msrb.mxu2 %v2346_v0  ;;  %v697_v51 = vmul.f32 %v628_v30, %v445_v43  ;;  %v705_v53 = vmul.f32 %v668_v48, %v453_v50  ;;  %v732_v55 = vpack.c.bf16 %v696_v52, %v696_v52  ;;  %v327_v56 = vadd.f32 %v2683_v9, %v326_v25 }
 0x128   :  { %v298_v61 = vpop.f32.mrf.mxu0  ;;  %v722_v22 = vpack.c.bf16 %v686_v5, %v686_v5  ;;  %v1555_v34 = vunpack.c.l.b16 %v739_v27  ;;  %v740_v57 = vpack.c.bf16 %v704_v17, %v704_v17  ;;  %v329_v59 = vadd.f32 %v2683_v9, %v328_v54 }
 0x129   :  { %v299_v63 = vadd.f32 %v2683_v9, %v298_v61  ;;  %v733_v39 = vpack.c.bf16 %v697_v51, %v697_v51  ;;  %v741_v60 = vpack.c.bf16 %v705_v53, %v705_v53  ;;  %v1356_v62 = vunpack.c.l.b16 %v732_v55 }
 0x12a   :  { %v1154_v37 = vunpack.c.l.b16 %v722_v22  ;;  %v1558_v26 = vpack.c.b16 %v1555_v34, %v1554_v32  ;;  %v1556_v0 = vunpack.c.l.b16 %v740_v57  ;;  %v411_v10 = vmul.f32 0.2, %v329_v59 }
 0x12b   :  { %vm363_vm11 = vcmp.gt.f32.partialorder %v299_v63, 0.0  ;;  %v399_v2 = vmul.f32 0.2, %v299_v63  ;;  %1516 = vmatpush.bf16.msrb.mxu2 %v2345_v20  ;;  %v1357_v61 = vunpack.c.l.b16 %v733_v39  ;;  %v1557_v5 = vunpack.c.l.b16 %v741_v60 }
 0x12c   :  { %vm374_vm0 = vcmp.gt.f32.partialorder %v327_v56, 0.0  ;;  %vm375_vm1 = vcmp.gt.f32.partialorder %v329_v59, 0.0  ;;  %v332_v27 = vadd.f32 %v2683_v9, %v2822_v36 }
 0x12d   :  { %v435_v33 = vsel %vm363_vm11, %v299_v63, %v399_v2  ;;  %v410_v63 = vmul.f32 0.2, %v327_v56  ;;  %v1359_v7 = vpack.c.b16 %v1357_v61, %v1356_v62  ;;  %v447_v2 = vsel %vm375_vm1, %v329_v59, %v411_v10 }
 0x12e   :  { %v687_v23 = vmul.f32 %v2766_v40, %v435_v33  ;;  %v1358_v40 = vpack.c.b16 %v1355_v15, %v1354_v49  ;;  %v1559_v11 = vpack.c.b16 %v1557_v5, %v1556_v0  ;;  %v699_v14 = vmul.f32 %v2920_v3, %v447_v2  ;;  %v2392_v5 = vld [vmem:[%s3001_s5] ss:$0 sm:$0xff] }
 0x12f   :  { %1517 = vmatpush.bf16.msrb.mxu2 %v2344_v29  ;;  %v446_v8 = vsel %vm374_vm0, %v327_v56, %v410_v63  ;;  %v412_v22 = vmul.f32 0.2, %v332_v27  ;;  %vm376_vm2 = vcmp.gt.f32.partialorder %v332_v27, 0.0  ;;  %vm1713_vm11 = vcmask 1024  }
 0x130   :  { %v723_v28 = vpack.c.bf16 %v687_v23, %v687_v23  ;;  %v698_v13 = vmul.f32 %v2922_v6, %v446_v8  ;;  %v735_v20 = vpack.c.bf16 %v699_v14, %v699_v14  ;;  %v413_v23 = vmul.f32 0.2, %v334_v4 }
 0x131   :  { %v448_v38 = vsel %vm376_vm2, %v332_v27, %v412_v22 }
 0x132   :  { %v1155_v41 = vunpack.c.l.b16 %v723_v28  ;;  %v734_v16 = vpack.c.bf16 %v698_v13, %v698_v13  ;;  %v1455_v33 = vunpack.c.l.b16 %v735_v20  ;;  %v700_v3 = vmul.f32 %v2957_v18, %v448_v38 }
 0x134   :  { %v1158_v42 = vpack.c.b16 %v1155_v41, %v1154_v37  ;;  %v1454_v21 = vunpack.c.l.b16 %v734_v16  ;;  %v736_v12 = vpack.c.bf16 %v700_v3, %v700_v3 }
 0x136   :  { %1218 = vmatmul.bf16.vlgmr.msra.gmra.mxu2 %v1158_v42  ;;  %1418 = vmatmul.bf16.vlgmr.msrb.gmra.mxu1 %v1358_v40  ;;  %v1458_v31 = vpack.c.b16 %v1455_v33, %v1454_v21  ;;  %v1456_v36 = vunpack.c.l.b16 %v736_v12  ;;  %v1653_v21 = vld [vmem:[%s3002_s6] sm:$0xff] }
 0x137   :  { %1618 = vmatmul.bf16.vlgmr.msrb.gmra.mxu3 %v1558_v26 }
 0x139   :  { %v923_v32 = vpop.f32.mrf.mxu2 }
 0x141   :  { %v925_v58 = vpop.f32.mrf.mxu2 }
 0x146   :  { %1223 = vmatmul.bf16.gmra.mxu2 %v1159_v46  ;;  %1423 = vmatmul.bf16.gmra.mxu1 %v1359_v7  ;;  %v449_v46 = vsel %vm377_vm3, %v334_v4, %v413_v23 }
 0x147   :  { %1623 = vmatmul.bf16.gmra.mxu3 %v1559_v11  ;;  %v701_v6 = vmul.f32 %v2954_v19, %v449_v46 }
 0x149   :  { %v737_v24 = vpack.c.bf16 %v701_v6, %v701_v6  ;;  %v928_v41 = vpop.f32.mrf.mxu2 }
 0x14b   :  { %v1457_v15 = vunpack.c.l.b16 %v737_v24 }
 0x14d   :  { %v1459_v49 = vpack.c.b16 %v1457_v15, %v1456_v36 }
 0x151   :  { %v930_v19 = vpop.f32.mrf.mxu2 }
 0x153   :  { %v844_v9 = vpop.f32.mrf.mxu1 }
 0x154   :  { %v924_v50 = vadd.f32 %v923_v32, %v844_v9 }
 0x156   :  { %1518 = vmatmul.bf16.vlgmr.msrb.gmra.mxu2 %v1458_v31 }
 0x15b   :  { %v846_v25 = vpop.f32.mrf.mxu1 }
 0x15c   :  { %v926_v55 = vadd.f32 %v925_v58, %v846_v25 }
 0x163   :  { %v849_v34 = vpop.f32.mrf.mxu1 }
 0x164   :  { %v929_v0 = vadd.f32 %v928_v41, %v849_v34 }
 0x166   :  { %1523 = vmatmul.bf16.gmra.mxu2 %v1459_v49 }
 0x16b   :  { %v851_v29 = vpop.f32.mrf.mxu1 }
 0x16c   :  { %v931_v22 = vadd.f32 %v930_v19, %v851_v29 }
 0x179   :  { %v1019_v1 = vpop.f32.mrf.mxu3 }
 0x17a   :  { %v1029_v52 = vadd.f32 %v1019_v1, %v924_v50  ;;  %v1654_v1 = vld [vmem:[%s3002_s6 + $0x8] sm:$0xff] }
 0x181   :  { %v1021_v28 = vpop.f32.mrf.mxu3 }
 0x182   :  { %v1030_v56 = vadd.f32 %v1021_v28, %v926_v55 }
 0x189   :  { %v1024_v35 = vpop.f32.mrf.mxu3 }
 0x18a   :  { %v1031_v8 = vadd.f32 %v1024_v35, %v929_v0 }
 0x191   :  { %v1026_v37 = vpop.f32.mrf.mxu3 }
 0x192   :  { %v1032_v46 = vadd.f32 %v1026_v37, %v931_v22 }
 0x193   :  { %v1119_v18 = vpop.f32.mrf.mxu1 }
 0x194   :  { %v1129_v17 = vadd.f32 %v1119_v18, %v1029_v52 }
 0x199   :  { %v1319_v40 = vpop.f32.mrf.mxu3 }
 0x19b   :  { %v1121_v42 = vpop.f32.mrf.mxu1 }
 0x19c   :  { %v1130_v60 = vadd.f32 %v1121_v42, %v1030_v56 }
 0x1a1   :  { %v1321_v26 = vpop.f32.mrf.mxu3 }
 0x1a3   :  { %v1124_v43 = vpop.f32.mrf.mxu1 }
 0x1a4   :  { %v1131_v13 = vadd.f32 %v1124_v43, %v1031_v8 }
 0x1a9   :  { %v1324_v44 = vpop.f32.mrf.mxu3 }
 0x1ab   :  { %v1126_v47 = vpop.f32.mrf.mxu1 }
 0x1ac   :  { %v1132_v24 = vadd.f32 %v1126_v47, %v1032_v46 }
 0x1b1   :  { %v1326_v51 = vpop.f32.mrf.mxu3 }
 0x1b3   :  { %v1419_v54 = vpop.f32.mrf.mxu1 }
 0x1b9   :  { %v1219_v30 = vpop.f32.mrf.mxu2 }
 0x1ba   :  { %v1229_v53 = vadd.f32 %v1219_v30, %v1129_v17  ;;  %v1619_v59 = vpop.f32.mrf.mxu3 }
 0x1bb   :  { %v1421_v7 = vpop.f32.mrf.mxu1 }
 0x1bc   :  { %v1329_v57 = vadd.f32 %v1319_v40, %v1229_v53 }
 0x1be   :  { %v1429_v62 = vadd.f32 %v1419_v54, %v1329_v57 }
 0x1c1   :  { %v1221_v45 = vpop.f32.mrf.mxu2 }
 0x1c2   :  { %v1230_v61 = vadd.f32 %v1221_v45, %v1130_v60  ;;  %v1621_v16 = vpop.f32.mrf.mxu3 }
 0x1c3   :  { %v1424_v12 = vpop.f32.mrf.mxu1 }
 0x1c4   :  { %v1330_v2 = vadd.f32 %v1321_v26, %v1230_v61 }
 0x1c6   :  { %v1430_v27 = vadd.f32 %v1421_v7, %v1330_v2 }
 0x1c9   :  { %v1224_v48 = vpop.f32.mrf.mxu2 }
 0x1ca   :  { %v1231_v20 = vadd.f32 %v1224_v48, %v1131_v13  ;;  %v1624_v25 = vpop.f32.mrf.mxu3 }
 0x1cb   :  { %v1426_v41 = vpop.f32.mrf.mxu1 }
 0x1cc   :  { %v1331_v3 = vadd.f32 %v1324_v44, %v1231_v20 }
 0x1ce   :  { %v1431_v49 = vadd.f32 %v1424_v12, %v1331_v3 }
 0x1d1   :  { %v1226_v39 = vpop.f32.mrf.mxu2 }
 0x1d2   :  { %v1232_v15 = vadd.f32 %v1226_v39, %v1132_v24  ;;  %v1626_v30 = vpop.f32.mrf.mxu3 }
 0x1d4   :  { %v1332_v58 = vadd.f32 %v1326_v51, %v1232_v15  ;;  %v1671_v51 = vlaneseq }
 0x1d6   :  { %v1432_v18 = vadd.f32 %v1426_v41, %v1332_v58  ;;  %v1672_v17 = vand.u32 127, %v1671_v51 }
 0x1d8   :  { %v1674_v53 = vadd.s32 4294967288, %v1672_v17 }
 0x1d9   :  { %v1519_v63 = vpop.f32.mrf.mxu2 }
 0x1da   :  { %v1529_v10 = vadd.f32 %v1519_v63, %v1429_v62 }
 0x1dc   :  { %v1629_v11 = vadd.f32 %v1619_v59, %v1529_v10  ;;  %v2393_v10 = vld [vmem:[#allocation2] ss:$0 sm:$0xff] }
 0x1de   :  { %v1637_v14 = vadd.f32 %v2392_v5, %v1629_v11 }
 0x1e0   :  { %vm1641_vm4 = vcmp.gt.f32.partialorder %v1637_v14, 0.0  ;;  %v1645_v4 = vmul.f32 0.2, %v1637_v14 }
 0x1e1   :  { %v1521_v33 = vpop.f32.mrf.mxu2 }
 0x1e2   :  { %v1530_v23 = vadd.f32 %v1521_v33, %v1430_v27  ;;  %v1649_v31 = vsel %vm1641_vm4, %v1637_v14, %v1645_v4 }
 0x1e3   :  { %v1655_v38 = vmul.f32 %v1653_v21, %v1649_v31 }
 0x1e4   :  { %v1630_v6 = vadd.f32 %v1621_v16, %v1530_v23 }
 0x1e5   :  { %1659 = vadd.xlane.f32.xlu0 %v1655_v38 }
 0x1e6   :  { %v1638_v36 = vadd.f32 %v2392_v5, %v1630_v6 }
 0x1e8   :  { %vm1642_vm5 = vcmp.gt.f32.partialorder %v1638_v36, 0.0  ;;  %v1646_v9 = vmul.f32 0.2, %v1638_v36 }
 0x1e9   :  { %v1524_v28 = vpop.f32.mrf.mxu2 }
 0x1ea   :  { %v1531_v32 = vadd.f32 %v1524_v28, %v1431_v49  ;;  %v1650_v34 = vsel %vm1642_vm5, %v1638_v36, %v1646_v9 }
 0x1eb   :  { %v1656_v35 = vmul.f32 %v1654_v1, %v1650_v34 }
 0x1ec   :  { %v1631_v29 = vadd.f32 %v1624_v25, %v1531_v32 }
 0x1ed   :  { %1661 = vadd.xlane.f32.xlu1 %v1656_v35 }
 0x1ee   :  { %v1639_v37 = vadd.f32 %v2392_v5, %v1631_v29 }
 0x1f0   :  { %vm1643_vm6 = vcmp.gt.f32.partialorder %v1639_v37, 0.0  ;;  %v1647_v40 = vmul.f32 0.2, %v1639_v37 }
 0x1f1   :  { %v1526_v19 = vpop.f32.mrf.mxu2 }
 0x1f2   :  { %v1532_v42 = vadd.f32 %v1526_v19, %v1432_v18  ;;  %v1651_v26 = vsel %vm1643_vm6, %v1639_v37, %v1647_v40 }
 0x1f3   :  { %v1657_v43 = vmul.f32 %v1653_v21, %v1651_v26  ;;  %v1693_v21 = vld [vmem:[%s3004_s8] sm:$0x3] }
 0x1f4   :  { %v1632_v44 = vadd.f32 %v1626_v30, %v1532_v42  ;;  %v1709_v38 = vsub.f32 1.0, %v1693_v21 }
 0x1f5   :  { %1663 = vadd.xlane.f32.xlu2 %v1657_v43 }
 0x1f6   :  { %v1640_v45 = vadd.f32 %v2392_v5, %v1632_v44 }
 0x1f8   :  { %vm1644_vm7 = vcmp.gt.f32.partialorder %v1640_v45, 0.0  ;;  %v1648_v47 = vmul.f32 0.2, %v1640_v45 }
 0x1fa   :  { %v1652_v48 = vsel %vm1644_vm7, %v1640_v45, %v1648_v47 }
 0x1fb   :  { %v1658_v50 = vmul.f32 %v1654_v1, %v1652_v48 }
 0x1fd   :  { %1665 = vadd.xlane.f32.xlu2 %v1658_v50 }
 0x258   :  { %v1660_v39 = vpop.xlane.xlu0 %1659 }
 0x259   :  { %v1673_v57 = vperm.slane %v1660_v39, %v1672_v17 }
 0x260   :  { %v1662_v54 = vpop.xlane.xlu1 %1661 }
 0x261   :  { %v1675_v55 = vperm.slane %v1662_v54, %v1674_v53 }
 0x263   :  { %v1677_v61 = vsel %vm1676_vm8, %v1675_v55, %v1673_v57 }
 0x268   :  { %v1664_v52 = vpop.xlane.xlu2 %1663 }
 0x269   :  { %v1678_v59 = vperm.slane %v1664_v52, %v1672_v17 }
 0x270   :  { %v1666_v56 = vpop.xlane.xlu2 %1665 }
 0x271   :  { %v1679_v60 = vperm.slane %v1666_v56, %v1674_v53 }
 0x273   :  { %v1680_v62 = vsel %vm1676_vm8, %v1679_v60, %v1678_v59 }
 0x274   :  { %v1682_v63 = vsel %vm1681_vm9, %v1680_v62, %v1677_v61 }
 0x275   :  { %v1685_v0 = vsel %vm1684_vm10, %v1682_v63, 0.0 }
 0x276   :  { %1686 = vadd.xlane.f32.xlu0 %v1685_v0 }
 0x2e9   :  { %v1687_v5 = vpop.xlane.xlu0 %1686 }
 0x2ea   :  { %v1692_v7 = vadd.f32 %v2393_v10, %v1687_v5 }
 0x2ec   :  { %v1695_v8 = vand.u32 2147483647, %v1692_v7  ;;  %v1694_v20 = vmax.f32 %v1692_v7, 0.0 }
 0x2ee   :  { %v1696_v2 = vsub.f32 0.0, %v1695_v8 }
 0x2f0   :  { %v1697_v11 = vmul.f32 1.442695, %v1696_v2 }
 0x2f2   :  { %2394 = vpow2.f32 %v1697_v11 }
 0x2f8   :  { %v2395_v13 = vpop.eup %2394 }
 0x2f9   :  { %v1699_v14 = vadd.f32 1.0, %v2395_v13 }
 0x2fb   :  { %2396 = vlog2.f32 %v1699_v14 }
 0x301   :  { %v2397_v16 = vpop.eup %2396 }
 0x302   :  { %v1701_v27 = vmul.f32 0.6931472, %v2397_v16 }
 0x304   :  { %v1702_v4 = vadd.f32 %v1701_v27, %v1694_v20 }
 0x306   :  { %v1703_v33 = vsub.f32 %v1702_v4, %v1692_v7  ;;  %v1706_v22 = vsub.f32 0.0, %v1702_v4 }
 0x308   :  { %v1704_v23 = vsub.f32 0.0, %v1703_v33  ;;  %v1707_v31 = vmax.f32 %v1706_v22, -100.0 }
 0x30a   :  { %v1705_v46 = vmax.f32 %v1704_v23, -100.0  ;;  %v1710_v6 = vmul.f32 %v1709_v38, %v1707_v31 }
 0x30c   :  { %v1708_v3 = vmul.f32 %v1705_v46, %v1693_v21 }
 0x30e   :  { %v1711_v12 = vadd.f32 %v1710_v6, %v1708_v3 }
 0x310   :  { %v1712_v24 = vsub.f32 0.0, %v1711_v12 }
 0x312   :  { %v1714_v36 = vsel %vm1713_vm11, %v1712_v24, 0.0 }
 0x313   :  { %1715 = vadd.xlane.f32.xlu1 %v1714_v36 }
 0x386   :  { %v1716_v15 = vpop.xlane.xlu1 %1715 }
 0x387   :  { %v1717_v49 = vrot.slane %v1716_v15, 4 }
 0x389   :  { %v1718_v9 = vadd.f32 %v1717_v49, %v1716_v15 }
 0x38b   :  { %v1719_v1 = vrot.slane %v1718_v9, 2 }
 0x38d   :  { %v1720_v25 = vadd.f32 %v1719_v1, %v1718_v9 }
 0x38f   :  { %v1721_v28 = vrot.slane %v1720_v25, 1 }
 0x391   :  { %v1722_v32 = vadd.f32 %v1721_v28, %v1720_v25 }
 0x393   :  { %2384 = vpush %v1722_v32 }
 0x3c4   :  { %s2385_s19 = spop %2384 }
 0x3c5   :  { %s1724_s1 = smul.f32 0.5, %s2385_s19 }
 0x3c7   :  { %1726 = sst [smem:[#allocation3]] %s1724_s1 }
 0x3c8   :  { %1735 = dma.smem_to_hbm %s2413_s20, 16, %s1733_s18, [#allocation4]  }
 0x3c9   :  { %2410 = dma.done.wait [#allocation4], 16  }
 0x3ca   :  { %2411 = vsyncadd [#allocation4], 4294967280 }
 0x3cb   :  { %1740 = sfence }
 0x3cc   :  { %1741 = vsyncpa [#allocation4], 1 }

</bundles_post_ra>
